<compile_context>
chip_gen: v7x
topology: tpu7x:2x2x1
jax: 0.10.0
libtpu: 0.0.40
codegen_flags: <defaults>
</compile_context>

<pallas_src>
import math
import functools

import jax
import jax.numpy as jnp
from jax.experimental import pallas as pl
from jax.experimental.pallas import tpu as pltpu  # noqa: F401  (kept for TPU-specific tuning hooks)


# ----------------------------- config ---------------------------------------
class Config:
    hpo_hidden_size = 16
    max_seq_len = 8
    hidden_size = 32
    num_attention_heads = 4
    intermediate_size = 64
    num_hidden_layers = 2
    vocab_size = 50
    initializer_range = 0.02
    layer_norm_eps = 1e-12
    # TODO(synk): hidden/attention dropout treated as identity (eval mode / p=0).


_LANES = 128  # lane width of the packed weight slab and of the padded logits


# ----------------------------- fused kernel ----------------------------------
def _generator_kernel(alpha_ref, lat_ref, mask_ref, slab_ref, o_ref, *,
                      B, S, H, nH, d, I, hpo, num_layers, eps):
    f32 = jnp.float32
    scale = 1.0 / math.sqrt(d)

    def layer_norm(x, g, b):
        mu = jnp.mean(x, axis=-1, keepdims=True)
        var = jnp.mean((x - mu) ** 2, axis=-1, keepdims=True)
        return (x - mu) * jax.lax.rsqrt(var + eps) * g + b

    def gelu(x):
        # TODO(synk): tanh-approx GELU (EUP slot); PyTorch BERT gelu is erf-based
        # (~1e-3 absolute difference).
        c = math.sqrt(2.0 / math.pi)
        return 0.5 * x * (1.0 + jnp.tanh(c * (x + 0.044715 * x * x * x)))

    # ---- latent mix: lat_vec[b] = sum_n sigmoid(alpha[b,n]) * latents[b,n,:] --------
    w = jax.nn.sigmoid(alpha_ref[...])                             # (B, N)
    lat_vec = jnp.sum(w[:, :, None] * lat_ref[...], axis=1)        # (B, hpo)

    # ---- dense_latent, batch folded into rows: h[(b,s), :] --------------------------
    dlw = slab_ref[0:S * hpo, 0:H].reshape(S, hpo, H)              # (S, hpo, H)
    dlb = slab_ref[S * hpo:S * hpo + S, 0:H]                       # (S, H)
    h_parts = []
    for b in range(B):                                             # static unroll, B=2
        lv = lat_vec[b:b + 1, :]                                   # (1, hpo)
        h_parts.append(jnp.sum(lv[:, :, None] * dlw, axis=1) + dlb)   # (S, H)
    h = jnp.concatenate(h_parts, axis=0)                           # (B*S, H)

    # ---- additive attention mask (block-diagonal across batch, precomputed) ---------
    ext_mask = mask_ref[...]                                       # (B*S, B*S)

    # ---- BERT encoder layers (statically unrolled) -----------------------------------
    base = S * hpo + S
    layer_rows = 3 * H + I + 8
    for li in range(num_layers):
        off = base + li * layer_rows
        qkvw = slab_ref[off:off + H, :]                            # (H, 128) = [Wq|Wk|Wv|0]
        aow = slab_ref[off + H:off + 2 * H, 0:H]                   # (H, H)
        i_w = slab_ref[off + 2 * H:off + 3 * H, 0:I]               # (H, I)
        o_w = slab_ref[off + 3 * H:off + 3 * H + I, 0:H]           # (I, H)
        vecs = slab_ref[off + 3 * H + I:off + 3 * H + I + 8, :]    # (8, 128) biases/LN

        # packed QKV: one MXU push; bias row 0 is [qb|kb|vb|0] (128 wide).
        qkv = jnp.dot(h, qkvw, preferred_element_type=f32) + vecs[0:1, :]   # (B*S, 128)

        ctx_parts = []
        for hd in range(nH):                                       # static unroll, nH=4
            qh = qkv[:, hd * d:(hd + 1) * d]                       # (B*S, d)
            kh = qkv[:, H + hd * d:H + (hd + 1) * d]
            vh = qkv[:, 2 * H + hd * d:2 * H + (hd + 1) * d]
            s_ = jnp.dot(qh, kh.T, preferred_element_type=f32) * scale + ext_mask
            # keep the row-max subtraction: required for stability with the -1e4 mask
            s_ = s_ - jnp.max(s_, axis=-1, keepdims=True)
            p = jnp.exp(s_)
            # approx=True routes the reciprocal to the EUP; use approx=False for exact
            # parity with PyTorch softmax (difference ~1e-4 relative).
            p = p * pl.reciprocal(jnp.sum(p, axis=-1, keepdims=True), approx=True)
            ctx_parts.append(jnp.dot(p, vh, preferred_element_type=f32))    # (B*S, d)
        ctx = jnp.concatenate(ctx_parts, axis=-1)                  # (B*S, H), head-major

        attn = jnp.dot(ctx, aow, preferred_element_type=f32) + vecs[1:2, 0:H]
        h1 = layer_norm(attn + h, vecs[2:3, 0:H], vecs[3:4, 0:H])

        inter = gelu(jnp.dot(h1, i_w, preferred_element_type=f32) + vecs[4:5, 0:I])
        out = jnp.dot(inter, o_w, preferred_element_type=f32) + vecs[5:6, 0:H]
        h = layer_norm(out + h1, vecs[6:7, 0:H], vecs[7:8, 0:H])

    # ---- vocab projection into a lane-dense (B*S, 128) padded slab -------------------
    voff = base + num_layers * layer_rows
    vw = slab_ref[voff:voff + H, :]                                # (H, 128) (50 valid cols)
    vblk = slab_ref[voff + H:voff + H + 8, :]                      # (8, 128); row 0 = bias
    logits = jnp.dot(h, vw, preferred_element_type=f32) + vblk[0:1, :]
    o_ref[...] = logits.astype(o_ref.dtype)


# ----------------------------- param packing ---------------------------------
def pack_params(params, cfg):
    """Packs all weights/biases into one contiguous (512, 128) f32 slab (single DMA)."""
    S, H = cfg.max_seq_len, cfg.hidden_size
    hpo = cfg.hpo_hidden_size
    I = cfg.intermediate_size

    def pad_lanes(x):
        x = jnp.asarray(x, jnp.float32)
        if x.ndim == 1:
            x = x[None, :]
        return jnp.pad(x, ((0, 0), (0, _LANES - x.shape[1])))

    rows = []
    # dense_latent weight (hpo, S*H) -> (S*hpo, H): row s*hpo+k holds W.T[k, s*H:(s+1)*H]
    dlw = params["dense_latent_w"].reshape(hpo, S, H).transpose(1, 0, 2).reshape(S * hpo, H)
    rows.append(pad_lanes(dlw))                                    # 128 rows
    rows.append(pad_lanes(params["dense_latent_b"].reshape(S, H)))  # 8 rows

    for lp in params["layers"]:
        qkvw = jnp.concatenate([lp["q_w"], lp["k_w"], lp["v_w"]], axis=1)   # (H, 3H)
        rows.append(pad_lanes(qkvw))                               # H rows (96 -> 128 lanes)
        rows.append(pad_lanes(lp["ao_w"]))                         # H rows
        rows.append(pad_lanes(lp["i_w"]))                          # H rows
        rows.append(pad_lanes(lp["o_w"]))                          # I rows
        qkvb = jnp.concatenate([lp["q_b"], lp["k_b"], lp["v_b"]], axis=0)   # (3H,)
        rows.append(jnp.concatenate([                              # 8 rows of biases/LN
            pad_lanes(qkvb), pad_lanes(lp["ao_b"]),
            pad_lanes(lp["aln_g"]), pad_lanes(lp["aln_b"]),
            pad_lanes(lp["i_b"]), pad_lanes(lp["o_b"]),
            pad_lanes(lp["oln_g"]), pad_lanes(lp["oln_b"])], axis=0))

    rows.append(pad_lanes(params["dense_w"]))                      # H rows (vocab -> 128)
    rows.append(jnp.concatenate([pad_lanes(params["dense_b"]),
                                 jnp.zeros((7, _LANES), jnp.float32)], axis=0))  # 8 rows
    slab = jnp.concatenate(rows, axis=0)                           # (512, 128)
    return slab


# ----------------------------- forward ----------------------------------------
def generator_forward(slab, cfg, alpha_inputs, all_hpo_latent_inputs, attention_mask=None):
    assert alpha_inputs.shape[1] == all_hpo_latent_inputs.shape[1]
    B = alpha_inputs.shape[0]
    hpo = all_hpo_latent_inputs.shape[2]
    S, H = cfg.max_seq_len, cfg.hidden_size
    nH = cfg.num_attention_heads
    BS = B * S

    if attention_mask is None:
        attention_mask = jnp.ones((B, S), jnp.float32)

    # (BS, BS) additive mask: PyTorch's (1 - mask) * -10000 per key inside each batch
    # block; -1e9 across batch blocks so folded-batch attention stays block-diagonal.
    bid = jnp.repeat(jnp.arange(B, dtype=jnp.int32), S)            # (BS,)
    key_mask = ((1.0 - attention_mask.astype(jnp.float32)) * -10000.0).reshape(BS)
    ext_mask = jnp.where(bid[:, None] == bid[None, :], key_mask[None, :], -1e9)

    kernel = functools.partial(
        _generator_kernel, B=B, S=S, H=H, nH=nH, d=H // nH,
        I=cfg.intermediate_size, hpo=hpo,
        num_layers=cfg.num_hidden_layers, eps=cfg.layer_norm_eps)

    padded = pl.pallas_call(
        kernel,
        out_shape=jax.ShapeDtypeStruct((BS, _LANES), jnp.float32),
    )(alpha_inputs.astype(jnp.float32),
      all_hpo_latent_inputs.astype(jnp.float32),
      ext_mask, slab)

    # TODO(synk): this slice is one extra XLA copy; keep the padded (B,S,128) logits if
    # the downstream consumer can handle them.
    return padded.reshape(B, S, _LANES)[:, :, :cfg.vocab_size]


# ----------------------------- params ----------------------------------------
def init_params(key, cfg):
    std = cfg.initializer_range
    H, I, S = cfg.hidden_size, cfg.intermediate_size, cfg.max_seq_len

    def lin(k, din, dout):  # weights stored (in, out) == PyTorch weight.T
        return (jax.random.normal(k, (din, dout), jnp.float32) * std,
                jnp.zeros((dout,), jnp.float32))

    keys = jax.random.split(key, 2 + cfg.num_hidden_layers)
    params = {}
    params["dense_latent_w"], params["dense_latent_b"] = lin(keys[0], cfg.hpo_hidden_size, S * H)
    params["dense_w"], params["dense_b"] = lin(keys[1], H, cfg.vocab_size)

    layers = []
    for li in range(cfg.num_hidden_layers):
        lk = jax.random.split(keys[2 + li], 6)
        lp = {}
        lp["q_w"], lp["q_b"] = lin(lk[0], H, H)
        lp["k_w"], lp["k_b"] = lin(lk[1], H, H)
        lp["v_w"], lp["v_b"] = lin(lk[2], H, H)
        lp["ao_w"], lp["ao_b"] = lin(lk[3], H, H)
        lp["aln_g"], lp["aln_b"] = jnp.ones((H,), jnp.float32), jnp.zeros((H,), jnp.float32)
        lp["i_w"], lp["i_b"] = lin(lk[4], H, I)
        lp["o_w"], lp["o_b"] = lin(lk[5], I, H)
        lp["oln_g"], lp["oln_b"] = jnp.ones((H,), jnp.float32), jnp.zeros((H,), jnp.float32)
        layers.append(lp)
    params["layers"] = layers
    return params


# ----------------------------- main -------------------------------------------
if __name__ == "__main__":
    cfg = Config()
    key = jax.random.PRNGKey(0)
    pkey, k1, k2 = jax.random.split(key, 3)
    params = init_params(pkey, cfg)
    slab = pack_params(params, cfg)            # packed once; single-DMA weight slab

    B, N_hpo = 2, 6
    alpha_inputs = jax.random.normal(k1, (B, N_hpo), jnp.float32)
    all_hpo_latent_inputs = jax.random.normal(k2, (B, N_hpo, cfg.hpo_hidden_size), jnp.float32)

    fwd = jax.jit(lambda s, a, l: generator_forward(s, cfg, a, l))
    out = jax.block_until_ready(fwd(slab, alpha_inputs, all_hpo_latent_inputs))
    assert out.shape == (B, cfg.max_seq_len, cfg.vocab_size)
    assert bool(jnp.all(jnp.isfinite(out)))
    print("KERNEL_OK")
</pallas_src>

<mosaic_0001>
module attributes {stable_mosaic.version = 11 : i64} {
  func.func @_generator_kernel(%arg0: memref<2x6xf32, #tpu.memory_space<vmem>>, %arg1: memref<2x6x16xf32, #tpu.memory_space<vmem>>, %arg2: memref<16x16xf32, #tpu.memory_space<vmem>>, %arg3: memref<512x128xf32, #tpu.memory_space<vmem>>, %arg4: memref<16x128xf32, #tpu.memory_space<vmem>>) attributes {dimension_semantics = [], scalar_prefetch = 0 : i64, scratch_operands = 0 : i64, tpu.core_type = #tpu.core_type<tc>} {
    %c0 = arith.constant 0 : index
    %c0_0 = arith.constant 0 : index
    %0 = vector.load %arg0[%c0, %c0_0] : memref<2x6xf32, #tpu.memory_space<vmem>>, vector<2x6xf32>
    %1 = arith.negf %0 : vector<2x6xf32>
    %2 = math.exp %1 : vector<2x6xf32>
    %cst = arith.constant 1.000000e+00 : f32
    %3 = vector.broadcast %cst : f32 to vector<2x6xf32>
    %4 = arith.addf %3, %2 : vector<2x6xf32>
    %5 = arith.divf %3, %4 : vector<2x6xf32>
    %6 = vector.shape_cast %5 : vector<2x6xf32> to vector<2x6x1xf32>
    %c0_1 = arith.constant 0 : index
    %c0_2 = arith.constant 0 : index
    %c0_3 = arith.constant 0 : index
    %7 = vector.load %arg1[%c0_1, %c0_2, %c0_3] : memref<2x6x16xf32, #tpu.memory_space<vmem>>, vector<2x6x16xf32>
    %8 = vector.broadcast %6 : vector<2x6x1xf32> to vector<2x6x16xf32>
    %9 = arith.mulf %8, %7 : vector<2x6x16xf32>
    %cst_4 = arith.constant dense<0.000000e+00> : vector<2x16xf32>
    %10 = vector.multi_reduction <add>, %9, %cst_4 [1] : vector<2x6x16xf32> to vector<2x16xf32>
    %c0_5 = arith.constant 0 : index
    %c0_6 = arith.constant 0 : index
    %11 = vector.load %arg3[%c0_5, %c0_6] : memref<512x128xf32, #tpu.memory_space<vmem>>, vector<128x32xf32>
    %12 = vector.shape_cast %11 : vector<128x32xf32> to vector<8x16x32xf32>
    %c128 = arith.constant 128 : index
    %c0_7 = arith.constant 0 : index
    %13 = vector.load %arg3[%c128, %c0_7] : memref<512x128xf32, #tpu.memory_space<vmem>>, vector<8x32xf32>
    %14 = vector.extract_strided_slice %10 {offsets = [0, 0], sizes = [1, 16], strides = [1, 1]} : vector<2x16xf32> to vector<1x16xf32>
    %15 = vector.shape_cast %14 : vector<1x16xf32> to vector<1x16x1xf32>
    %16 = vector.broadcast %15 : vector<1x16x1xf32> to vector<8x16x32xf32>
    %17 = arith.mulf %16, %12 : vector<8x16x32xf32>
    %cst_8 = arith.constant dense<0.000000e+00> : vector<8x32xf32>
    %18 = vector.multi_reduction <add>, %17, %cst_8 [1] : vector<8x16x32xf32> to vector<8x32xf32>
    %19 = arith.addf %18, %13 : vector<8x32xf32>
    %20 = vector.extract_strided_slice %10 {offsets = [1, 0], sizes = [1, 16], strides = [1, 1]} : vector<2x16xf32> to vector<1x16xf32>
    %21 = vector.shape_cast %20 : vector<1x16xf32> to vector<1x16x1xf32>
    %22 = vector.broadcast %21 : vector<1x16x1xf32> to vector<8x16x32xf32>
    %23 = arith.mulf %22, %12 : vector<8x16x32xf32>
    %cst_9 = arith.constant dense<0.000000e+00> : vector<8x32xf32>
    %24 = vector.multi_reduction <add>, %23, %cst_9 [1] : vector<8x16x32xf32> to vector<8x32xf32>
    %25 = arith.addf %24, %13 : vector<8x32xf32>
    %26 = tpu.concatenate %19, %25 in 0 : vector<8x32xf32>, vector<8x32xf32> -> vector<16x32xf32>
    %c0_10 = arith.constant 0 : index
    %c0_11 = arith.constant 0 : index
    %27 = vector.load %arg2[%c0_10, %c0_11] : memref<16x16xf32, #tpu.memory_space<vmem>>, vector<16x16xf32>
    %c136 = arith.constant 136 : index
    %c0_12 = arith.constant 0 : index
    %28 = vector.load %arg3[%c136, %c0_12] : memref<512x128xf32, #tpu.memory_space<vmem>>, vector<32x128xf32>
    %c168 = arith.constant 168 : index
    %c0_13 = arith.constant 0 : index
    %29 = vector.load %arg3[%c168, %c0_13] : memref<512x128xf32, #tpu.memory_space<vmem>>, vector<32x32xf32>
    %c200 = arith.constant 200 : index
    %c0_14 = arith.constant 0 : index
    %30 = vector.load %arg3[%c200, %c0_14] : memref<512x128xf32, #tpu.memory_space<vmem>>, vector<32x64xf32>
    %c232 = arith.constant 232 : index
    %c0_15 = arith.constant 0 : index
    %31 = vector.load %arg3[%c232, %c0_15] : memref<512x128xf32, #tpu.memory_space<vmem>>, vector<64x32xf32>
    %c296 = arith.constant 296 : index
    %c0_16 = arith.constant 0 : index
    %32 = vector.load %arg3[%c296, %c0_16] : memref<512x128xf32, #tpu.memory_space<vmem>>, vector<8x128xf32>
    %cst_17 = arith.constant dense<0.000000e+00> : vector<16x128xf32>
    %33 = tpu.matmul %26, %28, %cst_17 {dimension_numbers = #tpu.dot_dimension_numbers<[1], [0], [0], [1], [0, 0, 1, 1], [], []>} : vector<16x32xf32>, vector<32x128xf32>, vector<16x128xf32> -> vector<16x128xf32>
    %34 = vector.extract_strided_slice %32 {offsets = [0, 0], sizes = [1, 128], strides = [1, 1]} : vector<8x128xf32> to vector<1x128xf32>
    %35 = vector.broadcast %34 : vector<1x128xf32> to vector<16x128xf32>
    %36 = arith.addf %33, %35 : vector<16x128xf32>
    %37 = vector.extract_strided_slice %36 {offsets = [0, 0], sizes = [16, 8], strides = [1, 1]} : vector<16x128xf32> to vector<16x8xf32>
    %38 = vector.extract_strided_slice %36 {offsets = [0, 32], sizes = [16, 8], strides = [1, 1]} : vector<16x128xf32> to vector<16x8xf32>
    %39 = vector.extract_strided_slice %36 {offsets = [0, 64], sizes = [16, 8], strides = [1, 1]} : vector<16x128xf32> to vector<16x8xf32>
    %40 = tpu.transpose %38, [1, 0] : vector<16x8xf32> -> vector<8x16xf32>
    %cst_18 = arith.constant dense<0.000000e+00> : vector<16x16xf32>
    %41 = tpu.matmul %37, %40, %cst_18 {dimension_numbers = #tpu.dot_dimension_numbers<[1], [0], [0], [1], [0, 0, 1, 1], [], []>} : vector<16x8xf32>, vector<8x16xf32>, vector<16x16xf32> -> vector<16x16xf32>
    %cst_19 = arith.constant 0.353553385 : f32
    %42 = vector.broadcast %cst_19 : f32 to vector<16x16xf32>
    %43 = arith.mulf %41, %42 : vector<16x16xf32>
    %44 = arith.addf %43, %27 : vector<16x16xf32>
    %cst_20 = arith.constant dense<0xFF800000> : vector<16xf32>
    %45 = vector.multi_reduction <maximumf>, %44, %cst_20 [1] : vector<16x16xf32> to vector<16xf32>
    %46 = vector.shape_cast %45 : vector<16xf32> to vector<16x1xf32>
    %47 = vector.broadcast %46 : vector<16x1xf32> to vector<16x16xf32>
    %48 = arith.subf %44, %47 : vector<16x16xf32>
    %49 = math.exp %48 : vector<16x16xf32>
    %cst_21 = arith.constant dense<0.000000e+00> : vector<16xf32>
    %50 = vector.multi_reduction <add>, %49, %cst_21 [1] : vector<16x16xf32> to vector<16xf32>
    %51 = vector.shape_cast %50 : vector<16xf32> to vector<16x1xf32>
    %52 = tpu.reciprocal %51 {approx = true} : vector<16x1xf32> -> vector<16x1xf32>
    %53 = vector.broadcast %52 : vector<16x1xf32> to vector<16x16xf32>
    %54 = arith.mulf %49, %53 : vector<16x16xf32>
    %cst_22 = arith.constant dense<0.000000e+00> : vector<16x8xf32>
    %55 = tpu.matmul %54, %39, %cst_22 {dimension_numbers = #tpu.dot_dimension_numbers<[1], [0], [0], [1], [0, 0, 1, 1], [], []>} : vector<16x16xf32>, vector<16x8xf32>, vector<16x8xf32> -> vector<16x8xf32>
    %56 = vector.extract_strided_slice %36 {offsets = [0, 8], sizes = [16, 8], strides = [1, 1]} : vector<16x128xf32> to vector<16x8xf32>
    %57 = vector.extract_strided_slice %36 {offsets = [0, 40], sizes = [16, 8], strides = [1, 1]} : vector<16x128xf32> to vector<16x8xf32>
    %58 = vector.extract_strided_slice %36 {offsets = [0, 72], sizes = [16, 8], strides = [1, 1]} : vector<16x128xf32> to vector<16x8xf32>
    %59 = tpu.transpose %57, [1, 0] : vector<16x8xf32> -> vector<8x16xf32>
    %cst_23 = arith.constant dense<0.000000e+00> : vector<16x16xf32>
    %60 = tpu.matmul %56, %59, %cst_23 {dimension_numbers = #tpu.dot_dimension_numbers<[1], [0], [0], [1], [0, 0, 1, 1], [], []>} : vector<16x8xf32>, vector<8x16xf32>, vector<16x16xf32> -> vector<16x16xf32>
    %cst_24 = arith.constant 0.353553385 : f32
    %61 = vector.broadcast %cst_24 : f32 to vector<16x16xf32>
    %62 = arith.mulf %60, %61 : vector<16x16xf32>
    %63 = arith.addf %62, %27 : vector<16x16xf32>
    %cst_25 = arith.constant dense<0xFF800000> : vector<16xf32>
    %64 = vector.multi_reduction <maximumf>, %63, %cst_25 [1] : vector<16x16xf32> to vector<16xf32>
    %65 = vector.shape_cast %64 : vector<16xf32> to vector<16x1xf32>
    %66 = vector.broadcast %65 : vector<16x1xf32> to vector<16x16xf32>
    %67 = arith.subf %63, %66 : vector<16x16xf32>
    %68 = math.exp %67 : vector<16x16xf32>
    %cst_26 = arith.constant dense<0.000000e+00> : vector<16xf32>
    %69 = vector.multi_reduction <add>, %68, %cst_26 [1] : vector<16x16xf32> to vector<16xf32>
    %70 = vector.shape_cast %69 : vector<16xf32> to vector<16x1xf32>
    %71 = tpu.reciprocal %70 {approx = true} : vector<16x1xf32> -> vector<16x1xf32>
    %72 = vector.broadcast %71 : vector<16x1xf32> to vector<16x16xf32>
    %73 = arith.mulf %68, %72 : vector<16x16xf32>
    %cst_27 = arith.constant dense<0.000000e+00> : vector<16x8xf32>
    %74 = tpu.matmul %73, %58, %cst_27 {dimension_numbers = #tpu.dot_dimension_numbers<[1], [0], [0], [1], [0, 0, 1, 1], [], []>} : vector<16x16xf32>, vector<16x8xf32>, vector<16x8xf32> -> vector<16x8xf32>
    %75 = vector.extract_strided_slice %36 {offsets = [0, 16], sizes = [16, 8], strides = [1, 1]} : vector<16x128xf32> to vector<16x8xf32>
    %76 = vector.extract_strided_slice %36 {offsets = [0, 48], sizes = [16, 8], strides = [1, 1]} : vector<16x128xf32> to vector<16x8xf32>
    %77 = vector.extract_strided_slice %36 {offsets = [0, 80], sizes = [16, 8], strides = [1, 1]} : vector<16x128xf32> to vector<16x8xf32>
    %78 = tpu.transpose %76, [1, 0] : vector<16x8xf32> -> vector<8x16xf32>
    %cst_28 = arith.constant dense<0.000000e+00> : vector<16x16xf32>
    %79 = tpu.matmul %75, %78, %cst_28 {dimension_numbers = #tpu.dot_dimension_numbers<[1], [0], [0], [1], [0, 0, 1, 1], [], []>} : vector<16x8xf32>, vector<8x16xf32>, vector<16x16xf32> -> vector<16x16xf32>
    %cst_29 = arith.constant 0.353553385 : f32
    %80 = vector.broadcast %cst_29 : f32 to vector<16x16xf32>
    %81 = arith.mulf %79, %80 : vector<16x16xf32>
    %82 = arith.addf %81, %27 : vector<16x16xf32>
    %cst_30 = arith.constant dense<0xFF800000> : vector<16xf32>
    %83 = vector.multi_reduction <maximumf>, %82, %cst_30 [1] : vector<16x16xf32> to vector<16xf32>
    %84 = vector.shape_cast %83 : vector<16xf32> to vector<16x1xf32>
    %85 = vector.broadcast %84 : vector<16x1xf32> to vector<16x16xf32>
    %86 = arith.subf %82, %85 : vector<16x16xf32>
    %87 = math.exp %86 : vector<16x16xf32>
    %cst_31 = arith.constant dense<0.000000e+00> : vector<16xf32>
    %88 = vector.multi_reduction <add>, %87, %cst_31 [1] : vector<16x16xf32> to vector<16xf32>
    %89 = vector.shape_cast %88 : vector<16xf32> to vector<16x1xf32>
    %90 = tpu.reciprocal %89 {approx = true} : vector<16x1xf32> -> vector<16x1xf32>
    %91 = vector.broadcast %90 : vector<16x1xf32> to vector<16x16xf32>
    %92 = arith.mulf %87, %91 : vector<16x16xf32>
    %cst_32 = arith.constant dense<0.000000e+00> : vector<16x8xf32>
    %93 = tpu.matmul %92, %77, %cst_32 {dimension_numbers = #tpu.dot_dimension_numbers<[1], [0], [0], [1], [0, 0, 1, 1], [], []>} : vector<16x16xf32>, vector<16x8xf32>, vector<16x8xf32> -> vector<16x8xf32>
    %94 = vector.extract_strided_slice %36 {offsets = [0, 24], sizes = [16, 8], strides = [1, 1]} : vector<16x128xf32> to vector<16x8xf32>
    %95 = vector.extract_strided_slice %36 {offsets = [0, 56], sizes = [16, 8], strides = [1, 1]} : vector<16x128xf32> to vector<16x8xf32>
    %96 = vector.extract_strided_slice %36 {offsets = [0, 88], sizes = [16, 8], strides = [1, 1]} : vector<16x128xf32> to vector<16x8xf32>
    %97 = tpu.transpose %95, [1, 0] : vector<16x8xf32> -> vector<8x16xf32>
    %cst_33 = arith.constant dense<0.000000e+00> : vector<16x16xf32>
    %98 = tpu.matmul %94, %97, %cst_33 {dimension_numbers = #tpu.dot_dimension_numbers<[1], [0], [0], [1], [0, 0, 1, 1], [], []>} : vector<16x8xf32>, vector<8x16xf32>, vector<16x16xf32> -> vector<16x16xf32>
    %cst_34 = arith.constant 0.353553385 : f32
    %99 = vector.broadcast %cst_34 : f32 to vector<16x16xf32>
    %100 = arith.mulf %98, %99 : vector<16x16xf32>
    %101 = arith.addf %100, %27 : vector<16x16xf32>
    %cst_35 = arith.constant dense<0xFF800000> : vector<16xf32>
    %102 = vector.multi_reduction <maximumf>, %101, %cst_35 [1] : vector<16x16xf32> to vector<16xf32>
    %103 = vector.shape_cast %102 : vector<16xf32> to vector<16x1xf32>
    %104 = vector.broadcast %103 : vector<16x1xf32> to vector<16x16xf32>
    %105 = arith.subf %101, %104 : vector<16x16xf32>
    %106 = math.exp %105 : vector<16x16xf32>
    %cst_36 = arith.constant dense<0.000000e+00> : vector<16xf32>
    %107 = vector.multi_reduction <add>, %106, %cst_36 [1] : vector<16x16xf32> to vector<16xf32>
    %108 = vector.shape_cast %107 : vector<16xf32> to vector<16x1xf32>
    %109 = tpu.reciprocal %108 {approx = true} : vector<16x1xf32> -> vector<16x1xf32>
    %110 = vector.broadcast %109 : vector<16x1xf32> to vector<16x16xf32>
    %111 = arith.mulf %106, %110 : vector<16x16xf32>
    %cst_37 = arith.constant dense<0.000000e+00> : vector<16x8xf32>
    %112 = tpu.matmul %111, %96, %cst_37 {dimension_numbers = #tpu.dot_dimension_numbers<[1], [0], [0], [1], [0, 0, 1, 1], [], []>} : vector<16x16xf32>, vector<16x8xf32>, vector<16x8xf32> -> vector<16x8xf32>
    %113 = tpu.concatenate %55, %74, %93, %112 in 1 : vector<16x8xf32>, vector<16x8xf32>, vector<16x8xf32>, vector<16x8xf32> -> vector<16x32xf32>
    %cst_38 = arith.constant dense<0.000000e+00> : vector<16x32xf32>
    %114 = tpu.matmul %113, %29, %cst_38 {dimension_numbers = #tpu.dot_dimension_numbers<[1], [0], [0], [1], [0, 0, 1, 1], [], []>} : vector<16x32xf32>, vector<32x32xf32>, vector<16x32xf32> -> vector<16x32xf32>
    %115 = vector.extract_strided_slice %32 {offsets = [1, 0], sizes = [1, 32], strides = [1, 1]} : vector<8x128xf32> to vector<1x32xf32>
    %116 = vector.broadcast %115 : vector<1x32xf32> to vector<16x32xf32>
    %117 = arith.addf %114, %116 : vector<16x32xf32>
    %118 = arith.addf %117, %26 : vector<16x32xf32>
    %119 = vector.extract_strided_slice %32 {offsets = [2, 0], sizes = [1, 32], strides = [1, 1]} : vector<8x128xf32> to vector<1x32xf32>
    %120 = vector.extract_strided_slice %32 {offsets = [3, 0], sizes = [1, 32], strides = [1, 1]} : vector<8x128xf32> to vector<1x32xf32>
    %cst_39 = arith.constant dense<0.000000e+00> : vector<16xf32>
    %121 = vector.multi_reduction <add>, %118, %cst_39 [1] : vector<16x32xf32> to vector<16xf32>
    %122 = vector.shape_cast %121 : vector<16xf32> to vector<16x1xf32>
    %cst_40 = arith.constant 3.200000e+01 : f32
    %123 = vector.broadcast %cst_40 : f32 to vector<16x1xf32>
    %124 = arith.divf %122, %123 : vector<16x1xf32>
    %125 = vector.broadcast %124 : vector<16x1xf32> to vector<16x32xf32>
    %126 = arith.subf %118, %125 : vector<16x32xf32>
    %127 = arith.mulf %126, %126 : vector<16x32xf32>
    %cst_41 = arith.constant dense<0.000000e+00> : vector<16xf32>
    %128 = vector.multi_reduction <add>, %127, %cst_41 [1] : vector<16x32xf32> to vector<16xf32>
    %129 = vector.shape_cast %128 : vector<16xf32> to vector<16x1xf32>
    %cst_42 = arith.constant 3.200000e+01 : f32
    %130 = vector.broadcast %cst_42 : f32 to vector<16x1xf32>
    %131 = arith.divf %129, %130 : vector<16x1xf32>
    %132 = vector.broadcast %124 : vector<16x1xf32> to vector<16x32xf32>
    %133 = arith.subf %118, %132 : vector<16x32xf32>
    %cst_43 = arith.constant 9.99999996E-13 : f32
    %134 = vector.broadcast %cst_43 : f32 to vector<16x1xf32>
    %135 = arith.addf %131, %134 : vector<16x1xf32>
    %136 = math.rsqrt %135 : vector<16x1xf32>
    %137 = vector.broadcast %136 : vector<16x1xf32> to vector<16x32xf32>
    %138 = arith.mulf %133, %137 : vector<16x32xf32>
    %139 = vector.broadcast %119 : vector<1x32xf32> to vector<16x32xf32>
    %140 = arith.mulf %138, %139 : vector<16x32xf32>
    %141 = vector.broadcast %120 : vector<1x32xf32> to vector<16x32xf32>
    %142 = arith.addf %140, %141 : vector<16x32xf32>
    %cst_44 = arith.constant dense<0.000000e+00> : vector<16x64xf32>
    %143 = tpu.matmul %142, %30, %cst_44 {dimension_numbers = #tpu.dot_dimension_numbers<[1], [0], [0], [1], [0, 0, 1, 1], [], []>} : vector<16x32xf32>, vector<32x64xf32>, vector<16x64xf32> -> vector<16x64xf32>
    %144 = vector.extract_strided_slice %32 {offsets = [4, 0], sizes = [1, 64], strides = [1, 1]} : vector<8x128xf32> to vector<1x64xf32>
    %145 = vector.broadcast %144 : vector<1x64xf32> to vector<16x64xf32>
    %146 = arith.addf %143, %145 : vector<16x64xf32>
    %cst_45 = arith.constant 5.000000e-01 : f32
    %147 = vector.broadcast %cst_45 : f32 to vector<16x64xf32>
    %148 = arith.mulf %147, %146 : vector<16x64xf32>
    %cst_46 = arith.constant 4.471500e-02 : f32
    %149 = vector.broadcast %cst_46 : f32 to vector<16x64xf32>
    %150 = arith.mulf %149, %146 : vector<16x64xf32>
    %151 = arith.mulf %150, %146 : vector<16x64xf32>
    %152 = arith.mulf %151, %146 : vector<16x64xf32>
    %153 = arith.addf %146, %152 : vector<16x64xf32>
    %cst_47 = arith.constant 0.797884583 : f32
    %154 = vector.broadcast %cst_47 : f32 to vector<16x64xf32>
    %155 = arith.mulf %154, %153 : vector<16x64xf32>
    %156 = math.tanh %155 : vector<16x64xf32>
    %cst_48 = arith.constant 1.000000e+00 : f32
    %157 = vector.broadcast %cst_48 : f32 to vector<16x64xf32>
    %158 = arith.addf %157, %156 : vector<16x64xf32>
    %159 = arith.mulf %148, %158 : vector<16x64xf32>
    %cst_49 = arith.constant dense<0.000000e+00> : vector<16x32xf32>
    %160 = tpu.matmul %159, %31, %cst_49 {dimension_numbers = #tpu.dot_dimension_numbers<[1], [0], [0], [1], [0, 0, 1, 1], [], []>} : vector<16x64xf32>, vector<64x32xf32>, vector<16x32xf32> -> vector<16x32xf32>
    %161 = vector.extract_strided_slice %32 {offsets = [5, 0], sizes = [1, 32], strides = [1, 1]} : vector<8x128xf32> to vector<1x32xf32>
    %162 = vector.broadcast %161 : vector<1x32xf32> to vector<16x32xf32>
    %163 = arith.addf %160, %162 : vector<16x32xf32>
    %164 = arith.addf %163, %142 : vector<16x32xf32>
    %165 = vector.extract_strided_slice %32 {offsets = [6, 0], sizes = [1, 32], strides = [1, 1]} : vector<8x128xf32> to vector<1x32xf32>
    %166 = vector.extract_strided_slice %32 {offsets = [7, 0], sizes = [1, 32], strides = [1, 1]} : vector<8x128xf32> to vector<1x32xf32>
    %cst_50 = arith.constant dense<0.000000e+00> : vector<16xf32>
    %167 = vector.multi_reduction <add>, %164, %cst_50 [1] : vector<16x32xf32> to vector<16xf32>
    %168 = vector.shape_cast %167 : vector<16xf32> to vector<16x1xf32>
    %cst_51 = arith.constant 3.200000e+01 : f32
    %169 = vector.broadcast %cst_51 : f32 to vector<16x1xf32>
    %170 = arith.divf %168, %169 : vector<16x1xf32>
    %171 = vector.broadcast %170 : vector<16x1xf32> to vector<16x32xf32>
    %172 = arith.subf %164, %171 : vector<16x32xf32>
    %173 = arith.mulf %172, %172 : vector<16x32xf32>
    %cst_52 = arith.constant dense<0.000000e+00> : vector<16xf32>
    %174 = vector.multi_reduction <add>, %173, %cst_52 [1] : vector<16x32xf32> to vector<16xf32>
    %175 = vector.shape_cast %174 : vector<16xf32> to vector<16x1xf32>
    %cst_53 = arith.constant 3.200000e+01 : f32
    %176 = vector.broadcast %cst_53 : f32 to vector<16x1xf32>
    %177 = arith.divf %175, %176 : vector<16x1xf32>
    %178 = vector.broadcast %170 : vector<16x1xf32> to vector<16x32xf32>
    %179 = arith.subf %164, %178 : vector<16x32xf32>
    %cst_54 = arith.constant 9.99999996E-13 : f32
    %180 = vector.broadcast %cst_54 : f32 to vector<16x1xf32>
    %181 = arith.addf %177, %180 : vector<16x1xf32>
    %182 = math.rsqrt %181 : vector<16x1xf32>
    %183 = vector.broadcast %182 : vector<16x1xf32> to vector<16x32xf32>
    %184 = arith.mulf %179, %183 : vector<16x32xf32>
    %185 = vector.broadcast %165 : vector<1x32xf32> to vector<16x32xf32>
    %186 = arith.mulf %184, %185 : vector<16x32xf32>
    %187 = vector.broadcast %166 : vector<1x32xf32> to vector<16x32xf32>
    %188 = arith.addf %186, %187 : vector<16x32xf32>
    %c304 = arith.constant 304 : index
    %c0_55 = arith.constant 0 : index
    %189 = vector.load %arg3[%c304, %c0_55] : memref<512x128xf32, #tpu.memory_space<vmem>>, vector<32x128xf32>
    %c336 = arith.constant 336 : index
    %c0_56 = arith.constant 0 : index
    %190 = vector.load %arg3[%c336, %c0_56] : memref<512x128xf32, #tpu.memory_space<vmem>>, vector<32x32xf32>
    %c368 = arith.constant 368 : index
    %c0_57 = arith.constant 0 : index
    %191 = vector.load %arg3[%c368, %c0_57] : memref<512x128xf32, #tpu.memory_space<vmem>>, vector<32x64xf32>
    %c400 = arith.constant 400 : index
    %c0_58 = arith.constant 0 : index
    %192 = vector.load %arg3[%c400, %c0_58] : memref<512x128xf32, #tpu.memory_space<vmem>>, vector<64x32xf32>
    %c464 = arith.constant 464 : index
    %c0_59 = arith.constant 0 : index
    %193 = vector.load %arg3[%c464, %c0_59] : memref<512x128xf32, #tpu.memory_space<vmem>>, vector<8x128xf32>
    %cst_60 = arith.constant dense<0.000000e+00> : vector<16x128xf32>
    %194 = tpu.matmul %188, %189, %cst_60 {dimension_numbers = #tpu.dot_dimension_numbers<[1], [0], [0], [1], [0, 0, 1, 1], [], []>} : vector<16x32xf32>, vector<32x128xf32>, vector<16x128xf32> -> vector<16x128xf32>
    %195 = vector.extract_strided_slice %193 {offsets = [0, 0], sizes = [1, 128], strides = [1, 1]} : vector<8x128xf32> to vector<1x128xf32>
    %196 = vector.broadcast %195 : vector<1x128xf32> to vector<16x128xf32>
    %197 = arith.addf %194, %196 : vector<16x128xf32>
    %198 = vector.extract_strided_slice %197 {offsets = [0, 0], sizes = [16, 8], strides = [1, 1]} : vector<16x128xf32> to vector<16x8xf32>
    %199 = vector.extract_strided_slice %197 {offsets = [0, 32], sizes = [16, 8], strides = [1, 1]} : vector<16x128xf32> to vector<16x8xf32>
    %200 = vector.extract_strided_slice %197 {offsets = [0, 64], sizes = [16, 8], strides = [1, 1]} : vector<16x128xf32> to vector<16x8xf32>
    %201 = tpu.transpose %199, [1, 0] : vector<16x8xf32> -> vector<8x16xf32>
    %cst_61 = arith.constant dense<0.000000e+00> : vector<16x16xf32>
    %202 = tpu.matmul %198, %201, %cst_61 {dimension_numbers = #tpu.dot_dimension_numbers<[1], [0], [0], [1], [0, 0, 1, 1], [], []>} : vector<16x8xf32>, vector<8x16xf32>, vector<16x16xf32> -> vector<16x16xf32>
    %cst_62 = arith.constant 0.353553385 : f32
    %203 = vector.broadcast %cst_62 : f32 to vector<16x16xf32>
    %204 = arith.mulf %202, %203 : vector<16x16xf32>
    %205 = arith.addf %204, %27 : vector<16x16xf32>
    %cst_63 = arith.constant dense<0xFF800000> : vector<16xf32>
    %206 = vector.multi_reduction <maximumf>, %205, %cst_63 [1] : vector<16x16xf32> to vector<16xf32>
    %207 = vector.shape_cast %206 : vector<16xf32> to vector<16x1xf32>
    %208 = vector.broadcast %207 : vector<16x1xf32> to vector<16x16xf32>
    %209 = arith.subf %205, %208 : vector<16x16xf32>
    %210 = math.exp %209 : vector<16x16xf32>
    %cst_64 = arith.constant dense<0.000000e+00> : vector<16xf32>
    %211 = vector.multi_reduction <add>, %210, %cst_64 [1] : vector<16x16xf32> to vector<16xf32>
    %212 = vector.shape_cast %211 : vector<16xf32> to vector<16x1xf32>
    %213 = tpu.reciprocal %212 {approx = true} : vector<16x1xf32> -> vector<16x1xf32>
    %214 = vector.broadcast %213 : vector<16x1xf32> to vector<16x16xf32>
    %215 = arith.mulf %210, %214 : vector<16x16xf32>
    %cst_65 = arith.constant dense<0.000000e+00> : vector<16x8xf32>
    %216 = tpu.matmul %215, %200, %cst_65 {dimension_numbers = #tpu.dot_dimension_numbers<[1], [0], [0], [1], [0, 0, 1, 1], [], []>} : vector<16x16xf32>, vector<16x8xf32>, vector<16x8xf32> -> vector<16x8xf32>
    %217 = vector.extract_strided_slice %197 {offsets = [0, 8], sizes = [16, 8], strides = [1, 1]} : vector<16x128xf32> to vector<16x8xf32>
    %218 = vector.extract_strided_slice %197 {offsets = [0, 40], sizes = [16, 8], strides = [1, 1]} : vector<16x128xf32> to vector<16x8xf32>
    %219 = vector.extract_strided_slice %197 {offsets = [0, 72], sizes = [16, 8], strides = [1, 1]} : vector<16x128xf32> to vector<16x8xf32>
    %220 = tpu.transpose %218, [1, 0] : vector<16x8xf32> -> vector<8x16xf32>
    %cst_66 = arith.constant dense<0.000000e+00> : vector<16x16xf32>
    %221 = tpu.matmul %217, %220, %cst_66 {dimension_numbers = #tpu.dot_dimension_numbers<[1], [0], [0], [1], [0, 0, 1, 1], [], []>} : vector<16x8xf32>, vector<8x16xf32>, vector<16x16xf32> -> vector<16x16xf32>
    %cst_67 = arith.constant 0.353553385 : f32
    %222 = vector.broadcast %cst_67 : f32 to vector<16x16xf32>
    %223 = arith.mulf %221, %222 : vector<16x16xf32>
    %224 = arith.addf %223, %27 : vector<16x16xf32>
    %cst_68 = arith.constant dense<0xFF800000> : vector<16xf32>
    %225 = vector.multi_reduction <maximumf>, %224, %cst_68 [1] : vector<16x16xf32> to vector<16xf32>
    %226 = vector.shape_cast %225 : vector<16xf32> to vector<16x1xf32>
    %227 = vector.broadcast %226 : vector<16x1xf32> to vector<16x16xf32>
    %228 = arith.subf %224, %227 : vector<16x16xf32>
    %229 = math.exp %228 : vector<16x16xf32>
    %cst_69 = arith.constant dense<0.000000e+00> : vector<16xf32>
    %230 = vector.multi_reduction <add>, %229, %cst_69 [1] : vector<16x16xf32> to vector<16xf32>
    %231 = vector.shape_cast %230 : vector<16xf32> to vector<16x1xf32>
    %232 = tpu.reciprocal %231 {approx = true} : vector<16x1xf32> -> vector<16x1xf32>
    %233 = vector.broadcast %232 : vector<16x1xf32> to vector<16x16xf32>
    %234 = arith.mulf %229, %233 : vector<16x16xf32>
    %cst_70 = arith.constant dense<0.000000e+00> : vector<16x8xf32>
    %235 = tpu.matmul %234, %219, %cst_70 {dimension_numbers = #tpu.dot_dimension_numbers<[1], [0], [0], [1], [0, 0, 1, 1], [], []>} : vector<16x16xf32>, vector<16x8xf32>, vector<16x8xf32> -> vector<16x8xf32>
    %236 = vector.extract_strided_slice %197 {offsets = [0, 16], sizes = [16, 8], strides = [1, 1]} : vector<16x128xf32> to vector<16x8xf32>
    %237 = vector.extract_strided_slice %197 {offsets = [0, 48], sizes = [16, 8], strides = [1, 1]} : vector<16x128xf32> to vector<16x8xf32>
    %238 = vector.extract_strided_slice %197 {offsets = [0, 80], sizes = [16, 8], strides = [1, 1]} : vector<16x128xf32> to vector<16x8xf32>
    %239 = tpu.transpose %237, [1, 0] : vector<16x8xf32> -> vector<8x16xf32>
    %cst_71 = arith.constant dense<0.000000e+00> : vector<16x16xf32>
    %240 = tpu.matmul %236, %239, %cst_71 {dimension_numbers = #tpu.dot_dimension_numbers<[1], [0], [0], [1], [0, 0, 1, 1], [], []>} : vector<16x8xf32>, vector<8x16xf32>, vector<16x16xf32> -> vector<16x16xf32>
    %cst_72 = arith.constant 0.353553385 : f32
    %241 = vector.broadcast %cst_72 : f32 to vector<16x16xf32>
    %242 = arith.mulf %240, %241 : vector<16x16xf32>
    %243 = arith.addf %242, %27 : vector<16x16xf32>
    %cst_73 = arith.constant dense<0xFF800000> : vector<16xf32>
    %244 = vector.multi_reduction <maximumf>, %243, %cst_73 [1] : vector<16x16xf32> to vector<16xf32>
    %245 = vector.shape_cast %244 : vector<16xf32> to vector<16x1xf32>
    %246 = vector.broadcast %245 : vector<16x1xf32> to vector<16x16xf32>
    %247 = arith.subf %243, %246 : vector<16x16xf32>
    %248 = math.exp %247 : vector<16x16xf32>
    %cst_74 = arith.constant dense<0.000000e+00> : vector<16xf32>
    %249 = vector.multi_reduction <add>, %248, %cst_74 [1] : vector<16x16xf32> to vector<16xf32>
    %250 = vector.shape_cast %249 : vector<16xf32> to vector<16x1xf32>
    %251 = tpu.reciprocal %250 {approx = true} : vector<16x1xf32> -> vector<16x1xf32>
    %252 = vector.broadcast %251 : vector<16x1xf32> to vector<16x16xf32>
    %253 = arith.mulf %248, %252 : vector<16x16xf32>
    %cst_75 = arith.constant dense<0.000000e+00> : vector<16x8xf32>
    %254 = tpu.matmul %253, %238, %cst_75 {dimension_numbers = #tpu.dot_dimension_numbers<[1], [0], [0], [1], [0, 0, 1, 1], [], []>} : vector<16x16xf32>, vector<16x8xf32>, vector<16x8xf32> -> vector<16x8xf32>
    %255 = vector.extract_strided_slice %197 {offsets = [0, 24], sizes = [16, 8], strides = [1, 1]} : vector<16x128xf32> to vector<16x8xf32>
    %256 = vector.extract_strided_slice %197 {offsets = [0, 56], sizes = [16, 8], strides = [1, 1]} : vector<16x128xf32> to vector<16x8xf32>
    %257 = vector.extract_strided_slice %197 {offsets = [0, 88], sizes = [16, 8], strides = [1, 1]} : vector<16x128xf32> to vector<16x8xf32>
    %258 = tpu.transpose %256, [1, 0] : vector<16x8xf32> -> vector<8x16xf32>
    %cst_76 = arith.constant dense<0.000000e+00> : vector<16x16xf32>
    %259 = tpu.matmul %255, %258, %cst_76 {dimension_numbers = #tpu.dot_dimension_numbers<[1], [0], [0], [1], [0, 0, 1, 1], [], []>} : vector<16x8xf32>, vector<8x16xf32>, vector<16x16xf32> -> vector<16x16xf32>
    %cst_77 = arith.constant 0.353553385 : f32
    %260 = vector.broadcast %cst_77 : f32 to vector<16x16xf32>
    %261 = arith.mulf %259, %260 : vector<16x16xf32>
    %262 = arith.addf %261, %27 : vector<16x16xf32>
    %cst_78 = arith.constant dense<0xFF800000> : vector<16xf32>
    %263 = vector.multi_reduction <maximumf>, %262, %cst_78 [1] : vector<16x16xf32> to vector<16xf32>
    %264 = vector.shape_cast %263 : vector<16xf32> to vector<16x1xf32>
    %265 = vector.broadcast %264 : vector<16x1xf32> to vector<16x16xf32>
    %266 = arith.subf %262, %265 : vector<16x16xf32>
    %267 = math.exp %266 : vector<16x16xf32>
    %cst_79 = arith.constant dense<0.000000e+00> : vector<16xf32>
    %268 = vector.multi_reduction <add>, %267, %cst_79 [1] : vector<16x16xf32> to vector<16xf32>
    %269 = vector.shape_cast %268 : vector<16xf32> to vector<16x1xf32>
    %270 = tpu.reciprocal %269 {approx = true} : vector<16x1xf32> -> vector<16x1xf32>
    %271 = vector.broadcast %270 : vector<16x1xf32> to vector<16x16xf32>
    %272 = arith.mulf %267, %271 : vector<16x16xf32>
    %cst_80 = arith.constant dense<0.000000e+00> : vector<16x8xf32>
    %273 = tpu.matmul %272, %257, %cst_80 {dimension_numbers = #tpu.dot_dimension_numbers<[1], [0], [0], [1], [0, 0, 1, 1], [], []>} : vector<16x16xf32>, vector<16x8xf32>, vector<16x8xf32> -> vector<16x8xf32>
    %274 = tpu.concatenate %216, %235, %254, %273 in 1 : vector<16x8xf32>, vector<16x8xf32>, vector<16x8xf32>, vector<16x8xf32> -> vector<16x32xf32>
    %cst_81 = arith.constant dense<0.000000e+00> : vector<16x32xf32>
    %275 = tpu.matmul %274, %190, %cst_81 {dimension_numbers = #tpu.dot_dimension_numbers<[1], [0], [0], [1], [0, 0, 1, 1], [], []>} : vector<16x32xf32>, vector<32x32xf32>, vector<16x32xf32> -> vector<16x32xf32>
    %276 = vector.extract_strided_slice %193 {offsets = [1, 0], sizes = [1, 32], strides = [1, 1]} : vector<8x128xf32> to vector<1x32xf32>
    %277 = vector.broadcast %276 : vector<1x32xf32> to vector<16x32xf32>
    %278 = arith.addf %275, %277 : vector<16x32xf32>
    %279 = arith.addf %278, %188 : vector<16x32xf32>
    %280 = vector.extract_strided_slice %193 {offsets = [2, 0], sizes = [1, 32], strides = [1, 1]} : vector<8x128xf32> to vector<1x32xf32>
    %281 = vector.extract_strided_slice %193 {offsets = [3, 0], sizes = [1, 32], strides = [1, 1]} : vector<8x128xf32> to vector<1x32xf32>
    %cst_82 = arith.constant dense<0.000000e+00> : vector<16xf32>
    %282 = vector.multi_reduction <add>, %279, %cst_82 [1] : vector<16x32xf32> to vector<16xf32>
    %283 = vector.shape_cast %282 : vector<16xf32> to vector<16x1xf32>
    %cst_83 = arith.constant 3.200000e+01 : f32
    %284 = vector.broadcast %cst_83 : f32 to vector<16x1xf32>
    %285 = arith.divf %283, %284 : vector<16x1xf32>
    %286 = vector.broadcast %285 : vector<16x1xf32> to vector<16x32xf32>
    %287 = arith.subf %279, %286 : vector<16x32xf32>
    %288 = arith.mulf %287, %287 : vector<16x32xf32>
    %cst_84 = arith.constant dense<0.000000e+00> : vector<16xf32>
    %289 = vector.multi_reduction <add>, %288, %cst_84 [1] : vector<16x32xf32> to vector<16xf32>
    %290 = vector.shape_cast %289 : vector<16xf32> to vector<16x1xf32>
    %cst_85 = arith.constant 3.200000e+01 : f32
    %291 = vector.broadcast %cst_85 : f32 to vector<16x1xf32>
    %292 = arith.divf %290, %291 : vector<16x1xf32>
    %293 = vector.broadcast %285 : vector<16x1xf32> to vector<16x32xf32>
    %294 = arith.subf %279, %293 : vector<16x32xf32>
    %cst_86 = arith.constant 9.99999996E-13 : f32
    %295 = vector.broadcast %cst_86 : f32 to vector<16x1xf32>
    %296 = arith.addf %292, %295 : vector<16x1xf32>
    %297 = math.rsqrt %296 : vector<16x1xf32>
    %298 = vector.broadcast %297 : vector<16x1xf32> to vector<16x32xf32>
    %299 = arith.mulf %294, %298 : vector<16x32xf32>
    %300 = vector.broadcast %280 : vector<1x32xf32> to vector<16x32xf32>
    %301 = arith.mulf %299, %300 : vector<16x32xf32>
    %302 = vector.broadcast %281 : vector<1x32xf32> to vector<16x32xf32>
    %303 = arith.addf %301, %302 : vector<16x32xf32>
    %cst_87 = arith.constant dense<0.000000e+00> : vector<16x64xf32>
    %304 = tpu.matmul %303, %191, %cst_87 {dimension_numbers = #tpu.dot_dimension_numbers<[1], [0], [0], [1], [0, 0, 1, 1], [], []>} : vector<16x32xf32>, vector<32x64xf32>, vector<16x64xf32> -> vector<16x64xf32>
    %305 = vector.extract_strided_slice %193 {offsets = [4, 0], sizes = [1, 64], strides = [1, 1]} : vector<8x128xf32> to vector<1x64xf32>
    %306 = vector.broadcast %305 : vector<1x64xf32> to vector<16x64xf32>
    %307 = arith.addf %304, %306 : vector<16x64xf32>
    %cst_88 = arith.constant 5.000000e-01 : f32
    %308 = vector.broadcast %cst_88 : f32 to vector<16x64xf32>
    %309 = arith.mulf %308, %307 : vector<16x64xf32>
    %cst_89 = arith.constant 4.471500e-02 : f32
    %310 = vector.broadcast %cst_89 : f32 to vector<16x64xf32>
    %311 = arith.mulf %310, %307 : vector<16x64xf32>
    %312 = arith.mulf %311, %307 : vector<16x64xf32>
    %313 = arith.mulf %312, %307 : vector<16x64xf32>
    %314 = arith.addf %307, %313 : vector<16x64xf32>
    %cst_90 = arith.constant 0.797884583 : f32
    %315 = vector.broadcast %cst_90 : f32 to vector<16x64xf32>
    %316 = arith.mulf %315, %314 : vector<16x64xf32>
    %317 = math.tanh %316 : vector<16x64xf32>
    %cst_91 = arith.constant 1.000000e+00 : f32
    %318 = vector.broadcast %cst_91 : f32 to vector<16x64xf32>
    %319 = arith.addf %318, %317 : vector<16x64xf32>
    %320 = arith.mulf %309, %319 : vector<16x64xf32>
    %cst_92 = arith.constant dense<0.000000e+00> : vector<16x32xf32>
    %321 = tpu.matmul %320, %192, %cst_92 {dimension_numbers = #tpu.dot_dimension_numbers<[1], [0], [0], [1], [0, 0, 1, 1], [], []>} : vector<16x64xf32>, vector<64x32xf32>, vector<16x32xf32> -> vector<16x32xf32>
    %322 = vector.extract_strided_slice %193 {offsets = [5, 0], sizes = [1, 32], strides = [1, 1]} : vector<8x128xf32> to vector<1x32xf32>
    %323 = vector.broadcast %322 : vector<1x32xf32> to vector<16x32xf32>
    %324 = arith.addf %321, %323 : vector<16x32xf32>
    %325 = arith.addf %324, %303 : vector<16x32xf32>
    %326 = vector.extract_strided_slice %193 {offsets = [6, 0], sizes = [1, 32], strides = [1, 1]} : vector<8x128xf32> to vector<1x32xf32>
    %327 = vector.extract_strided_slice %193 {offsets = [7, 0], sizes = [1, 32], strides = [1, 1]} : vector<8x128xf32> to vector<1x32xf32>
    %cst_93 = arith.constant dense<0.000000e+00> : vector<16xf32>
    %328 = vector.multi_reduction <add>, %325, %cst_93 [1] : vector<16x32xf32> to vector<16xf32>
    %329 = vector.shape_cast %328 : vector<16xf32> to vector<16x1xf32>
    %cst_94 = arith.constant 3.200000e+01 : f32
    %330 = vector.broadcast %cst_94 : f32 to vector<16x1xf32>
    %331 = arith.divf %329, %330 : vector<16x1xf32>
    %332 = vector.broadcast %331 : vector<16x1xf32> to vector<16x32xf32>
    %333 = arith.subf %325, %332 : vector<16x32xf32>
    %334 = arith.mulf %333, %333 : vector<16x32xf32>
    %cst_95 = arith.constant dense<0.000000e+00> : vector<16xf32>
    %335 = vector.multi_reduction <add>, %334, %cst_95 [1] : vector<16x32xf32> to vector<16xf32>
    %336 = vector.shape_cast %335 : vector<16xf32> to vector<16x1xf32>
    %cst_96 = arith.constant 3.200000e+01 : f32
    %337 = vector.broadcast %cst_96 : f32 to vector<16x1xf32>
    %338 = arith.divf %336, %337 : vector<16x1xf32>
    %339 = vector.broadcast %331 : vector<16x1xf32> to vector<16x32xf32>
    %340 = arith.subf %325, %339 : vector<16x32xf32>
    %cst_97 = arith.constant 9.99999996E-13 : f32
    %341 = vector.broadcast %cst_97 : f32 to vector<16x1xf32>
    %342 = arith.addf %338, %341 : vector<16x1xf32>
    %343 = math.rsqrt %342 : vector<16x1xf32>
    %344 = vector.broadcast %343 : vector<16x1xf32> to vector<16x32xf32>
    %345 = arith.mulf %340, %344 : vector<16x32xf32>
    %346 = vector.broadcast %326 : vector<1x32xf32> to vector<16x32xf32>
    %347 = arith.mulf %345, %346 : vector<16x32xf32>
    %348 = vector.broadcast %327 : vector<1x32xf32> to vector<16x32xf32>
    %349 = arith.addf %347, %348 : vector<16x32xf32>
    %c472 = arith.constant 472 : index
    %c0_98 = arith.constant 0 : index
    %350 = vector.load %arg3[%c472, %c0_98] : memref<512x128xf32, #tpu.memory_space<vmem>>, vector<32x128xf32>
    %c504 = arith.constant 504 : index
    %c0_99 = arith.constant 0 : index
    %351 = vector.load %arg3[%c504, %c0_99] : memref<512x128xf32, #tpu.memory_space<vmem>>, vector<8x128xf32>
    %cst_100 = arith.constant dense<0.000000e+00> : vector<16x128xf32>
    %352 = tpu.matmul %349, %350, %cst_100 {dimension_numbers = #tpu.dot_dimension_numbers<[1], [0], [0], [1], [0, 0, 1, 1], [], []>} : vector<16x32xf32>, vector<32x128xf32>, vector<16x128xf32> -> vector<16x128xf32>
    %353 = vector.extract_strided_slice %351 {offsets = [0, 0], sizes = [1, 128], strides = [1, 1]} : vector<8x128xf32> to vector<1x128xf32>
    %354 = vector.broadcast %353 : vector<1x128xf32> to vector<16x128xf32>
    %355 = arith.addf %352, %354 : vector<16x128xf32>
    %c0_101 = arith.constant 0 : index
    %c0_102 = arith.constant 0 : index
    %356 = vector.load %arg4[%c0_101, %c0_102] : memref<16x128xf32, #tpu.memory_space<vmem>>, vector<16x128xf32>
    tpu.vector_store %arg4[%c0_101, %c0_102], %355 {strides = array<i32>} : memref<16x128xf32, #tpu.memory_space<vmem>>, vector<16x128xf32>,
    return
  }
}

</mosaic_0001>

<bundles_post_ra>
// kernel: eq.8
= control target key start
LH: loop header
LB: loop body
LE: loop exit
PB: predicated region body
PF: predicated region fallthrough
CT: control target
= control target key end

     0   :  { %vm7_vm0 = vcmask 64512   ;;  %vm13_vm1 = vcmask 130112   ;;  %s39_s0 = inlined_call_operand.vmem [shape: s32[2,8], index: 0, kind: input, shape index: {}]   ;;  %s40_s1 = inlined_call_operand.vmem [shape: s32[16], index: 1, kind: output, shape index: {}]  }
   0x1   :  { %v4_v0 = vld [vmem:[%s39_s0] sm:$0x3]  ;;  %s22_s0 = smov 8  }
   0x2   :  { %5 = vst [vmem:[#allocation1] sm:$0x3] %v4_v0 }
   0x9   :  { %v10_v1 = vld [vmem:[#allocation1 + $0x1] sm:$0x1]   ;;  %v6_v2 = vld [vmem:[#allocation1] sm:$0x1]  }
   0xa   :  { %11 = vrot.lane.b32.xlu0 %v10_v1, %s22_s0  ;;  %8 = vst.msk [vmem:[#allocation0] sm:$0x1] %vm7_vm0, %v6_v2  }
  0x7c   :  { %v12_v3 = vpop.permute.xlu0 %11  }
  0x7d   :  { %14 = vst.msk [vmem:[#allocation0] sm:$0x1] %vm13_vm1, %v12_v3  }
  0x84   :  { %v18_v4 = vld [vmem:[#allocation0] sm:$0x1] }
  0x85   :  { %20 = vst [vmem:[%s40_s1] sm:$0x1] %v18_v4 }

// kernel: _lambda_.1
= control target key start
LH: loop header
LB: loop body
LE: loop exit
PB: predicated region body
PF: predicated region fallthrough
CT: control target
= control target key end

     0   :  { %9 = vsyncpa [#allocation3], 0  ;;  %s4525_s0 = inlined_call_operand.vmem [shape: f32[2,6], index: 0, kind: input, shape index: {}]   ;;  %s4526_s1 = inlined_call_operand.vmem [shape: f32[2,6,16], index: 1, kind: input, shape index: {}]   ;;  %s4527_s2 = inlined_call_operand.vmem [shape: f32[16,16], index: 2, kind: input, shape index: {}]   ;;  %s4528_s3 = inlined_call_operand.hbm [shape: f32[512,128], index: 3, kind: input, shape index: {}]   ;;  %s4529_s4 = inlined_call_operand.hbm [shape: f32[16,128], index: 4, kind: output, shape index: {}]  }
   0x1   :  { %10 = vsyncpa [#allocation4], 0  ;;  %s3912_s15 = smov [#allocation2]   ;;  %s3864_s19 = scalar_lea.hbm %s4528_s3, 8192 }
   0x2   :  { %s22_s16 = sshll.u32 %s3912_s15, 4  ;;  %p3865_p0 = scmp.ne.s32.totalorder %s4528_s3, %s3864_s19  ;;  %s23_s16 = int_to_ptr.vmem [resolvable:$true] %s22_s16 }
   0x3   :  { %p3868_p1 = scmp.lt.u32.totalorder %s3864_s19, %s4528_s3 }
   0x5   :  { %p3870_p2 = pnand %p3868_p1, %p3865_p0 }
   0x7   :  { %3873 = shalt.err (!%p3870_p2)
}
   0x8   :  { %s3874_s24 = scalar_lea.vmem %s23_s16, 8192  ;;  %p3879_p4 = scmp.lt.s32.totalorder %s23_s16, %s23_s16 }
   0x9   :  { %p3875_p3 = scmp.ne.s32.totalorder %s23_s16, %s3874_s24  ;;  %p3880_p5 = scmp.lt.s32.totalorder %s3874_s24, %s3874_s24 }
   0xb   :  { %p3881_p6 = por %p3880_p5, %p3879_p4 }
   0xd   :  { %p3882_p7 = pnand %p3881_p6, %p3875_p3 }
   0xf   :  { %3885 = shalt.err (!%p3882_p7)
}
  0x10   :  { %s3913_s25 = smov 128   ;;  %s3914_s26 = smov 8  }
  0x11   :  { %28 = dma.hbm_to_vmem [thread:$0]  %s4528_s3, 8192, %s23_s16, [#allocation3], %s3913_s25, %s3913_s25, %s3914_s26  }
  0x12   :  { %3908 = dma.done.wait [#allocation3], 8192  }
  0x13   :  { %3909 = vsyncadd [#allocation3], 4294959104  ;;  %v32_v0 = vld [vmem:[%s4525_s0] sm:$0x3]  ;;  %v39_v4 = vlaneseq  ;;  %vm57_vm0 = vcmask 128000   ;;  %v367_v31 = vld [vmem:[#allocation2 + $0x88] sm:$0xff] }
  0x14   :  { %v3085_v1 = vmul.f32 -1.442695, %v32_v0  ;;  %v53_v11 = vld [vmem:[%s4526_s1] sm:$0x3f]  ;;  %v54_v14 = vld [vmem:[%s4526_s1 + $0x8] sm:$0x3f] }
  0x15   :  { %v3972_v5 = vshrl.u32 %v39_v4, 7  ;;  %v368_v32 = vld [vmem:[#allocation2 + $0x90] sm:$0xff]  ;;  %v369_v33 = vld [vmem:[#allocation2 + $0x98] sm:$0xff]  ;;  %v370_v35 = vld [vmem:[#allocation2 + $0xa0] sm:$0xff]  ;;  %vm112_vm1 = vcmask 261120   ;;  %vm321_vm2 = vcmask 1041409  }
  0x16   :  { %3770 = vpow2.f32 %v3085_v1  ;;  %v3505_v34 = vpack.c.bf16 %v368_v32, %v367_v31  ;;  %v3509_v36 = vpack.c.bf16 %v370_v35, %v369_v33  ;;  %v3988_v37 = vld [vmem:[#allocation2 + $0x80] sm:$0xff]  ;;  %v74_v39 = vld [vmem:[#allocation2 + $0x10] sm:$0xff]  ;;  %v73_v58 = vld [vmem:[#allocation2 + $0x8] sm:$0xff]  ;;  %vm324_vm3 = vcmask 1042434   ;;  %s3915_s1 = smov 96   ;;  %s3916_s11 = smov 88  }
  0x17   :  { %v3975_v6 = vsub.s32 0, %v3972_v5  ;;  %v3978_v7 = vsub.s32 1, %v3972_v5  ;;  %v72_v38 = vld [vmem:[#allocation2] sm:$0xff]  ;;  %v78_v41 = vld [vmem:[#allocation2 + $0x30] sm:$0xff]  ;;  %v186_v46 = vrot.slane %v3988_v37, 1  ;;  %v187_v47 = vrot.slane %v3988_v37, 2 }
  0x18   :  { %3506 = vmatprep.subr.bf16.mxu0 %v3505_v34  ;;  %v76_v40 = vld [vmem:[#allocation2 + $0x20] sm:$0xff]  ;;  %v82_v43 = vld [vmem:[#allocation2 + $0x50] sm:$0xff]  ;;  %v188_v48 = vrot.slane %v3988_v37, 3  ;;  %v189_v50 = vrot.slane %v3988_v37, 4  ;;  %v190_v51 = vrot.slane %v3988_v37, 5  ;;  %v191_v52 = vrot.slane %v3988_v37, 6 }
  0x19   :  { %3508 = vmatpush3.bf16.msra.mxu0 %v3505_v34  ;;  %v80_v42 = vld [vmem:[#allocation2 + $0x40] sm:$0xff]  ;;  %v3990_v45 = vld [vmem:[#allocation2 + $0x70] sm:$0xff]  ;;  %v192_v53 = vrot.slane %v3988_v37, 7  ;;  %v75_v61 = vld [vmem:[#allocation2 + $0x18] sm:$0xff]  ;;  %vm327_vm4 = vcmask 1043459   ;;  %vm330_vm5 = vcmask 1044484  }
  0x1a   :  { %3510 = vmatprep.subr.bf16.mxu0 %v3509_v36  ;;  %v84_v44 = vld [vmem:[#allocation2 + $0x60] sm:$0xff]  ;;  %v77_v62 = vld [vmem:[#allocation2 + $0x28] sm:$0xff]  ;;  %v79_v63 = vld [vmem:[#allocation2 + $0x38] sm:$0xff]  ;;  %vm333_vm6 = vcmask 1045509   ;;  %vm336_vm7 = vcmask 1046534   ;;  %vm339_vm8 = vcmask 1047559  }
  0x1b   :  { %vm477_vm9 = vcmask 64512   ;;  %vm565_vm11 = vcmask 130048   ;;  %s3917_s12 = smov 120   ;;  %s3918_s13 = smov 64   ;;  %vm1315_vm12 = vcmask 195584   ;;  %vm1551_vm13 = vcmask 523264  }
  0x1c   :  { %vm4177_vm10 = vmpackc.low %vm477_vm9, %vm477_vm9  ;;  %s3919_s14 = smov 80   ;;  %s3920_s15 = smov 112  }
  0x1d   :  { %3512 = vmatpush3.bf16.msra.mxu0 %v3509_v36  ;;  %s3921_s16 = smov 56   ;;  %s3922_s17 = smov 72  }
  0x1e   :  { %s3923_s18 = smov 104   ;;  %s3924_s19 = smov 48  }
  0x1f   :  { %s3925_s20 = smov 40   ;;  %s3926_s21 = smov 16  }
  0x20   :  { %v3771_v2 = vpop.eup %3770  ;;  %s3927_s22 = smov 24  }
  0x21   :  { %v36_v3 = vadd.f32 1.0, %v3771_v2 }
  0x23   :  { %3772 = vrcp.f32 %v36_v3 }
  0x2d   :  { %v3773_v8 = vpop.eup %3772 }
  0x2e   :  { %v42_v9 = vrot.slane %v3773_v8, %v3975_v6  ;;  %v49_v10 = vrot.slane %v3773_v8, %v3978_v7 }
  0x30   :  { %44 = vbcast.lane.b32.xlu0 %v42_v9, 256  ;;  %v81_v9 = vld [vmem:[#allocation2 + $0x48] sm:$0xff] }
  0x34   :  { %51 = vbcast.lane.b32.xlu0 %v49_v10, 256  ;;  %v83_v10 = vld [vmem:[#allocation2 + $0x58] sm:$0xff] }
  0xa2   :  { %v45_v12 = vpop.permute.xlu0 %44 }
  0xa3   :  { %v55_v13 = vmul.f32 %v53_v11, %v45_v12 }
  0xa5   :  { %v58_v15 = vsel %vm57_vm0, %v55_v13, 0.0 }
  0xa6   :  { %v59_v16 = vrot.slane %v58_v15, 4  ;;  %v52_v17 = vpop.permute.xlu0 %51 }
  0xa7   :  { %v56_v18 = vmul.f32 %v54_v14, %v52_v17 }
  0xa8   :  { %v60_v19 = vadd.f32 %v59_v16, %v58_v15 }
  0xa9   :  { %v65_v20 = vsel %vm57_vm0, %v56_v18, 0.0 }
  0xaa   :  { %v66_v21 = vrot.slane %v65_v20, 4  ;;  %v61_v22 = vrot.slane %v60_v19, 2 }
  0xac   :  { %v67_v23 = vadd.f32 %v66_v21, %v65_v20  ;;  %v62_v24 = vadd.f32 %v61_v22, %v60_v19 }
  0xae   :  { %v63_v25 = vrot.slane %v62_v24, 1  ;;  %v68_v26 = vrot.slane %v67_v23, 2 }
  0xb0   :  { %v64_v27 = vadd.f32 %v63_v25, %v62_v24  ;;  %v69_v28 = vadd.f32 %v68_v26, %v67_v23 }
  0xb2   :  { %90 = vbcast.lane.b32.xlu1 %v64_v27, 256  ;;  %v70_v29 = vrot.slane %v69_v28, 1 }
  0xb4   :  { %v71_v30 = vadd.f32 %v70_v29, %v69_v28 }
  0xb6   :  { %94 = vbcast.lane.b32.xlu1 %v64_v27, 264  ;;  %210 = vbcast.lane.b32.xlu0 %v71_v30, 256 }
  0xba   :  { %214 = vbcast.lane.b32.xlu1 %v71_v30, 264 }
 0x124   :  { %v91_v49 = vpop.permute.xlu1 %90 }
 0x125   :  { %v96_v54 = vmul.f32 %v91_v49, %v72_v38  ;;  %v98_v55 = vmul.f32 %v91_v49, %v74_v39  ;;  %v100_v56 = vmul.f32 %v91_v49, %v76_v40  ;;  %v102_v57 = vmul.f32 %v91_v49, %v78_v41 }
 0x126   :  { %v104_v59 = vmul.f32 %v91_v49, %v80_v42  ;;  %v106_v60 = vmul.f32 %v91_v49, %v82_v43  ;;  %v108_v0 = vmul.f32 %v91_v49, %v84_v44  ;;  %v110_v1 = vmul.f32 %v91_v49, %v3990_v45 }
 0x127   :  { %v113_v2 = vsel %vm112_vm1, %v96_v54, 0.0  ;;  %v122_v3 = vsel %vm112_vm1, %v98_v55, 0.0  ;;  %v131_v4 = vsel %vm112_vm1, %v100_v56, 0.0  ;;  %v4004_v8 = vsel %vm112_vm1, %v102_v57, 0.0 }
 0x128   :  { %v95_v11 = vpop.permute.xlu1 %94  ;;  %v4006_v12 = vpop.permute.xlu0 %210  ;;  %v4009_v13 = vsel %vm112_vm1, %v104_v59, 0.0  ;;  %v4012_v14 = vsel %vm112_vm1, %v106_v60, 0.0  ;;  %v4015_v15 = vsel %vm112_vm1, %v108_v0, 0.0  ;;  %v4018_v16 = vsel %vm112_vm1, %v110_v1, 0.0 }
 0x129   :  { %v97_v17 = vmul.f32 %v95_v11, %v73_v58  ;;  %v99_v18 = vmul.f32 %v95_v11, %v75_v61  ;;  %v101_v19 = vmul.f32 %v95_v11, %v77_v62  ;;  %v103_v20 = vmul.f32 %v95_v11, %v79_v63 }
 0x12a   :  { %v105_v21 = vmul.f32 %v95_v11, %v81_v9  ;;  %v4020_v22 = vmul.f32 %v95_v11, %v83_v10  ;;  %v216_v23 = vmul.f32 %v4006_v12, %v72_v38  ;;  %v218_v24 = vmul.f32 %v4006_v12, %v74_v39 }
 0x12b   :  { %v114_v25 = vsel %vm112_vm1, %v97_v17, 0.0  ;;  %v123_v26 = vsel %vm112_vm1, %v99_v18, 0.0  ;;  %v132_v27 = vsel %vm112_vm1, %v101_v19, 0.0  ;;  %v141_v28 = vsel %vm112_vm1, %v103_v20, 0.0 }
 0x12c   :  { %v115_v29 = vadd.f32 %v114_v25, %v113_v2  ;;  %v124_v30 = vadd.f32 %v123_v26, %v122_v3  ;;  %v133_v31 = vadd.f32 %v132_v27, %v131_v4  ;;  %v220_v32 = vmul.f32 %v4006_v12, %v76_v40  ;;  %v4035_v38 = vpop.permute.xlu1 %214  ;;  %v4054_v4 = vld [vmem:[#allocation2 + $0x78] sm:$0xff] }
 0x12d   :  { %v222_v33 = vmul.f32 %v4006_v12, %v78_v41  ;;  %v224_v34 = vmul.f32 %v4006_v12, %v80_v42  ;;  %v226_v35 = vmul.f32 %v4006_v12, %v82_v43  ;;  %v4033_v36 = vmul.f32 %v4006_v12, %v84_v44  ;;  %v85_v43 = vld [vmem:[#allocation2 + $0x68] sm:$0xff] }
 0x12e   :  { %v116_v39 = vrot.slane %v115_v29, 4  ;;  %v125_v49 = vrot.slane %v124_v30, 4  ;;  %v232_v54 = vsel %vm112_vm1, %v216_v23, 0.0  ;;  %v241_v55 = vsel %vm112_vm1, %v218_v24, 0.0 }
 0x12f   :  { %v250_v56 = vsel %vm112_vm1, %v220_v32, 0.0  ;;  %v259_v40 = vsel %vm112_vm1, %v222_v33, 0.0  ;;  %v268_v41 = vsel %vm112_vm1, %v224_v34, 0.0  ;;  %v4043_v42 = vsel %vm112_vm1, %v226_v35, 0.0 }
 0x130   :  { %v126_v44 = vadd.f32 %v125_v49, %v124_v30  ;;  %v217_v57 = vmul.f32 %v4035_v38, %v73_v58  ;;  %v219_v59 = vmul.f32 %v4035_v38, %v75_v61  ;;  %v221_v60 = vmul.f32 %v4035_v38, %v77_v62 }
 0x131   :  { %v223_v0 = vmul.f32 %v4035_v38, %v79_v63  ;;  %v225_v1 = vmul.f32 %v4035_v38, %v81_v9  ;;  %v227_v2 = vmul.f32 %v4035_v38, %v83_v10  ;;  %v4052_v3 = vmul.f32 %v4035_v38, %v85_v43 }
 0x132   :  { %v233_v17 = vsel %vm112_vm1, %v217_v57, 0.0  ;;  %v242_v18 = vsel %vm112_vm1, %v219_v59, 0.0  ;;  %v251_v58 = vsel %vm112_vm1, %v221_v60, 0.0  ;;  %v109_v61 = vmul.f32 %v95_v11, %v85_v43 }
 0x133   :  { %v234_v19 = vadd.f32 %v233_v17, %v232_v54  ;;  %v243_v62 = vadd.f32 %v242_v18, %v241_v55  ;;  %v252_v20 = vadd.f32 %v251_v58, %v250_v56  ;;  %v260_v63 = vsel %vm112_vm1, %v223_v0, 0.0 }
 0x134   :  { %v4060_v9 = vadd.f32 %v260_v63, %v259_v40  ;;  %v269_v10 = vsel %vm112_vm1, %v225_v1, 0.0  ;;  %v4064_v23 = vsel %vm112_vm1, %v227_v2, 0.0  ;;  %v111_v24 = vmul.f32 %v95_v11, %v4054_v4 }
 0x135   :  { %v235_v25 = vrot.slane %v234_v19, 4  ;;  %v244_v26 = vrot.slane %v243_v62, 4  ;;  %v253_v27 = vrot.slane %v252_v20, 4  ;;  %v4067_v30 = vadd.f32 %v269_v10, %v268_v41 }
 0x136   :  { %v262_v32 = vrot.slane %v4060_v9, 4  ;;  %v117_v33 = vadd.f32 %v116_v39, %v115_v29  ;;  %v127_v34 = vrot.slane %v126_v44, 2  ;;  %v134_v35 = vrot.slane %v133_v31, 4 }
 0x137   :  { %v236_v49 = vadd.f32 %v235_v25, %v234_v19  ;;  %v4070_v54 = vadd.f32 %v244_v26, %v243_v62  ;;  %v4072_v55 = vadd.f32 %v253_v27, %v252_v20  ;;  %v142_v56 = vadd.f32 %v141_v28, %v4004_v8 }
 0x138   :  { %v118_v40 = vrot.slane %v117_v33, 2  ;;  %v128_v43 = vadd.f32 %v127_v34, %v126_v44  ;;  %v135_v11 = vadd.f32 %v134_v35, %v133_v31  ;;  %v150_v57 = vsel %vm112_vm1, %v105_v21, 0.0 }
 0x139   :  { %v237_v59 = vrot.slane %v236_v49, 2  ;;  %v246_v41 = vrot.slane %v4070_v54, 2  ;;  %v143_v60 = vrot.slane %v142_v56, 4  ;;  %v151_v29 = vadd.f32 %v150_v57, %v4009_v13 }
 0x13a   :  { %v119_v39 = vadd.f32 %v118_v40, %v117_v33  ;;  %v129_v0 = vrot.slane %v128_v43, 1  ;;  %v136_v1 = vrot.slane %v135_v11, 2  ;;  %v159_v2 = vsel %vm112_vm1, %v4020_v22, 0.0 }
 0x13b   :  { %v144_v17 = vadd.f32 %v143_v60, %v142_v56  ;;  %v152_v8 = vrot.slane %v151_v29, 4  ;;  %v160_v28 = vadd.f32 %v159_v2, %v4012_v14  ;;  %v168_v31 = vsel %vm112_vm1, %v109_v61, 0.0 }
 0x13c   :  { %v120_v21 = vrot.slane %v119_v39, 1  ;;  %v130_v44 = vadd.f32 %v129_v0, %v128_v43  ;;  %v137_v18 = vadd.f32 %v136_v1, %v135_v11  ;;  %v169_v58 = vadd.f32 %v168_v31, %v4015_v15 }
 0x13d   :  { %v145_v13 = vrot.slane %v144_v17, 2  ;;  %v153_v19 = vadd.f32 %v152_v8, %v151_v29  ;;  %v161_v62 = vrot.slane %v160_v28, 4  ;;  %v177_v20 = vsel %vm112_vm1, %v111_v24, 0.0 }
 0x13e   :  { %v121_v63 = vadd.f32 %v120_v21, %v119_v39  ;;  %v138_v22 = vrot.slane %v137_v18, 1  ;;  %v170_v10 = vrot.slane %v169_v58, 4  ;;  %v178_v25 = vadd.f32 %v177_v20, %v4018_v16 }
 0x13f   :  { %v146_v14 = vadd.f32 %v145_v13, %v144_v17  ;;  %v154_v26 = vrot.slane %v153_v19, 2  ;;  %v162_v61 = vadd.f32 %v161_v62, %v160_v28  ;;  %v202_v27 = vadd.f32 %v186_v46, %v130_v44 }
 0x140   :  { %v139_v33 = vadd.f32 %v138_v22, %v137_v18  ;;  %v171_v34 = vadd.f32 %v170_v10, %v169_v58  ;;  %v179_v15 = vrot.slane %v178_v25, 4  ;;  %v201_v35 = vadd.f32 %v121_v63, %v3988_v37 }
 0x141   :  { %v147_v56 = vrot.slane %v146_v14, 1  ;;  %v155_v24 = vadd.f32 %v154_v26, %v153_v19  ;;  %v163_v40 = vrot.slane %v162_v61, 2  ;;  %v230_v43 = vmul.f32 %v4006_v12, %v3990_v45 }
 0x142   :  { %v172_v16 = vrot.slane %v171_v34, 2  ;;  %v180_v11 = vadd.f32 %v179_v15, %v178_v25  ;;  %v203_v57 = vadd.f32 %v187_v47, %v139_v33  ;;  %v231_v60 = vmul.f32 %v4035_v38, %v4054_v4 }
 0x143   :  { %v148_v29 = vadd.f32 %v147_v56, %v146_v14  ;;  %v156_v39 = vrot.slane %v155_v24, 1  ;;  %v164_v0 = vadd.f32 %v163_v40, %v162_v61  ;;  %v320_v1 = vrot.slane %v202_v27, 7 }
 0x144   :  { %v173_v2 = vadd.f32 %v172_v16, %v171_v34  ;;  %v181_v17 = vrot.slane %v180_v11, 2  ;;  %v323_v8 = vrot.slane %v203_v57, 6  ;;  %v238_v28 = vadd.f32 %v237_v59, %v236_v49 }
 0x145   :  { %v157_v31 = vadd.f32 %v156_v39, %v155_v24  ;;  %v165_v45 = vrot.slane %v164_v0, 1  ;;  %v204_v12 = vadd.f32 %v188_v48, %v148_v29  ;;  %v322_v21 = vsel %vm321_vm2, %v320_v1, %v201_v35 }
 0x146   :  { %v174_v44 = vrot.slane %v173_v2, 1  ;;  %v182_v38 = vadd.f32 %v181_v17, %v180_v11  ;;  %v325_v4 = vsel %vm324_vm3, %v323_v8, %v322_v21  ;;  %v239_v18 = vrot.slane %v238_v28, 1 }
 0x147   :  { %v166_v58 = vadd.f32 %v165_v45, %v164_v0  ;;  %v205_v13 = vadd.f32 %v189_v50, %v157_v31  ;;  %v326_v19 = vrot.slane %v204_v12, 5  ;;  %v247_v49 = vadd.f32 %v246_v41, %v4070_v54 }
 0x148   :  { %v175_v59 = vadd.f32 %v174_v44, %v173_v2  ;;  %v183_v62 = vrot.slane %v182_v38, 1  ;;  %v240_v20 = vadd.f32 %v239_v18, %v238_v28  ;;  %v255_v63 = vrot.slane %v4072_v55, 2 }
 0x149   :  { %v206_v22 = vadd.f32 %v190_v51, %v166_v58  ;;  %v328_v10 = vsel %vm327_vm4, %v326_v19, %v325_v4  ;;  %v329_v25 = vrot.slane %v205_v13, 4  ;;  %v248_v14 = vrot.slane %v247_v49, 1 }
 0x14a   :  { %v184_v26 = vadd.f32 %v183_v62, %v182_v38  ;;  %v207_v61 = vadd.f32 %v191_v52, %v175_v59  ;;  %v256_v27 = vadd.f32 %v255_v63, %v4072_v55  ;;  %v263_v54 = vadd.f32 %v262_v32, %v4060_v9 }
 0x14b   :  { %v331_v41 = vsel %vm330_vm5, %v329_v25, %v328_v10  ;;  %v332_v33 = vrot.slane %v206_v22, 3  ;;  %v249_v34 = vadd.f32 %v248_v14, %v247_v49  ;;  %v271_v15 = vrot.slane %v4067_v30, 4 }
 0x14c   :  { %v208_v35 = vadd.f32 %v192_v53, %v184_v26  ;;  %v335_v56 = vrot.slane %v207_v61, 2  ;;  %v257_v24 = vrot.slane %v256_v27, 1  ;;  %v264_v40 = vrot.slane %v263_v54, 2 }
 0x14d   :  { %v334_v16 = vsel %vm333_vm6, %v332_v33, %v331_v41  ;;  %v272_v55 = vadd.f32 %v271_v15, %v4067_v30  ;;  %v279_v11 = vadd.f32 %v4064_v23, %v4043_v42  ;;  %v286_v9 = vsel %vm112_vm1, %v4033_v36, 0.0 }
 0x14e   :  { %v337_v32 = vsel %vm336_vm7, %v335_v56, %v334_v16  ;;  %v338_v57 = vrot.slane %v208_v35, 1  ;;  %v258_v29 = vadd.f32 %v257_v24, %v256_v27  ;;  %v265_v39 = vadd.f32 %v264_v40, %v263_v54 }
 0x14f   :  { %v273_v0 = vrot.slane %v272_v55, 2  ;;  %v280_v1 = vrot.slane %v279_v11, 4  ;;  %v287_v2 = vsel %vm112_vm1, %v4052_v3, 0.0  ;;  %v295_v17 = vsel %vm112_vm1, %v230_v43, 0.0 }
 0x150   :  { %v4128_v30 = vsel %vm339_vm8, %v338_v57, %v337_v32  ;;  %v266_v8 = vrot.slane %v265_v39, 1  ;;  %v288_v42 = vadd.f32 %v287_v2, %v286_v9  ;;  %v296_v23 = vsel %vm112_vm1, %v231_v60, 0.0 }
 0x151   :  { %3286 = vmatprep.mubr.msk.f32.mxu0 %vm112_vm1, %v4128_v30  ;;  %v274_v36 = vadd.f32 %v273_v0, %v272_v55  ;;  %v281_v28 = vadd.f32 %v280_v1, %v279_v11  ;;  %v297_v31 = vadd.f32 %v296_v23, %v295_v17  ;;  %v305_v3 = vadd.f32 %v249_v34, %v186_v46 }
 0x152   :  { %v267_v45 = vadd.f32 %v266_v8, %v265_v39  ;;  %v289_v12 = vrot.slane %v288_v42, 4  ;;  %v306_v43 = vadd.f32 %v258_v29, %v187_v47  ;;  %v304_v4 = vadd.f32 %v240_v20, %v3988_v37  ;;  %v4190_v8 = vld [vmem:[%s4527_s2 + $0x8] sm:$0xff] }
 0x153   :  { %v275_v21 = vrot.slane %v274_v36, 1  ;;  %v282_v44 = vrot.slane %v281_v28, 2  ;;  %v298_v38 = vrot.slane %v297_v31, 4  ;;  %v350_v58 = vrot.slane %v305_v3, 7 }
 0x154   :  { %v290_v60 = vadd.f32 %v289_v12, %v288_v42  ;;  %v307_v18 = vadd.f32 %v267_v45, %v188_v48  ;;  %v352_v13 = vrot.slane %v306_v43, 6 }
 0x155   :  { %v276_v19 = vadd.f32 %v275_v21, %v274_v36  ;;  %v283_v49 = vadd.f32 %v282_v44, %v281_v28  ;;  %v299_v59 = vadd.f32 %v298_v38, %v297_v31  ;;  %v351_v46 = vsel %vm321_vm2, %v350_v58, %v304_v4  ;;  %v4195_v36 = vld [vmem:[%s4527_s2] sm:$0xff] }
 0x156   :  { %v291_v62 = vrot.slane %v290_v60, 2  ;;  %v354_v63 = vrot.slane %v307_v18, 5  ;;  %v353_v20 = vsel %vm324_vm3, %v352_v13, %v351_v46 }
 0x157   :  { %v284_v22 = vrot.slane %v283_v49, 1  ;;  %v300_v47 = vrot.slane %v299_v59, 2  ;;  %v308_v10 = vadd.f32 %v276_v19, %v189_v50 }
 0x158   :  { %v292_v25 = vadd.f32 %v291_v62, %v290_v60  ;;  %v355_v48 = vsel %vm327_vm4, %v354_v63, %v353_v20 }
 0x159   :  { %v285_v14 = vadd.f32 %v284_v22, %v283_v49  ;;  %v301_v26 = vadd.f32 %v300_v47, %v299_v59  ;;  %v356_v27 = vrot.slane %v308_v10, 4 }
 0x15a   :  { %v293_v61 = vrot.slane %v292_v25, 1 }
 0x15b   :  { %v302_v54 = vrot.slane %v301_v26, 1  ;;  %v309_v41 = vadd.f32 %v285_v14, %v190_v51  ;;  %v357_v34 = vsel %vm330_vm5, %v356_v27, %v355_v48  ;;  %v4159_v51 = vld [vmem:[#allocation2 + $0x128] sm:$0xff] }
 0x15c   :  { %v294_v33 = vadd.f32 %v293_v61, %v292_v25 }
 0x15d   :  { %v303_v15 = vadd.f32 %v302_v54, %v301_v26  ;;  %v358_v35 = vrot.slane %v309_v41, 3 }
 0x15e   :  { %v310_v50 = vadd.f32 %v294_v33, %v191_v52  ;;  %v391_v52 = vrot.slane %v4159_v51, %v3975_v6 }
 0x15f   :  { %v311_v56 = vadd.f32 %v303_v15, %v192_v53  ;;  %v359_v24 = vsel %vm333_vm6, %v358_v35, %v357_v34 }
 0x160   :  { %v360_v40 = vrot.slane %v310_v50, 2 }
 0x161   :  { %v362_v16 = vrot.slane %v311_v56, 1 }
 0x162   :  { %v361_v55 = vsel %vm336_vm7, %v360_v40, %v359_v24 }
 0x163   :  { %v4155_v11 = vsel %vm339_vm8, %v362_v16, %v361_v55 }
 0x164   :  { %3287 = vmatmul.mubr.msk.f32.vlgmr.msra.gmra.mrb[0].mxu0 %vm112_vm1, %v4155_v11 }
 0x237   :  { %v3288_v9 = vpop.f32.mrb[0].mxu0 }
 0x238   :  { %v4163_v37 = vadd.f32 %v3288_v9, %v391_v52  ;;  %v462_v53 = vpop.f32.mrb[1].mxu0 }
 0x239   :  { %v4165_v32 = vadd.f32 %v462_v53, %v391_v52 }
 0x23b   :  { %3293 = vmatprep.mubr.msk.f32.mxu1 %vm477_vm9, %v4165_v32  ;;  %v4171_v57 = vpack.i.bf16 %v4163_v37, %v4165_v32 }
 0x23d   :  { %3691 = vrot.lane.b32.xlu0 %v4171_v57, %s3915_s1 }
 0x2af   :  { %v3692_v29 = vpop.permute.xlu0 %3691 }
 0x2b0   :  { %v3694_v39 = vunpack.i.h.bf16 %v3692_v29  ;;  %v3693_v0 = vunpack.i.l.bf16 %v3692_v29 }
 0x2b2   :  { %v3513_v2 = vpack.c.bf16 %v3694_v39, %v3693_v0 }
 0x2b4   :  { %3515 = vmatprep.subr.msk.bf16.mxu1 %vm4177_vm10, %v3513_v2 }
 0x2b5   :  { %3518 = vmatpush3.bf16.xpose.msk.msra.mxu1 %vm4177_vm10, %v3513_v2 }
 0x2bc   :  { %3294 = vmatmul.mubr.msk.f32.vlgmr.msra.gmra.mrb[0].mxu1 %vm477_vm9, %v4163_v37 }
 0x38f   :  { %v3295_v17 = vpop.f32.mrb[0].mxu1 }
 0x390   :  { %v562_v42 = vmul.f32 0.35355338, %v3295_v17  ;;  %v552_v23 = vpop.f32.mrb[1].mxu1 }
 0x391   :  { %v561_v28 = vmul.f32 0.35355338, %v552_v23 }
 0x392   :  { %v564_v31 = vadd.f32 %v562_v42, %v4190_v8 }
 0x393   :  { %v563_v45 = vadd.f32 %v561_v28, %v4195_v36 }
 0x394   :  { %v569_v12 = vsel %vm565_vm11, %v564_v31, -inf }
 0x395   :  { %570 = vmax.xlane.f32.xlu0 %v569_v12  ;;  %v566_v3 = vsel %vm565_vm11, %v563_v45, -inf }
 0x396   :  { %567 = vmax.xlane.f32.xlu1 %v566_v3 }
 0x422   :  { %v571_v43 = vpop.xlane.xlu0 %570 }
 0x423   :  { %v573_v21 = vsub.f32 %v564_v31, %v571_v43  ;;  %v568_v44 = vpop.xlane.xlu1 %567 }
 0x424   :  { %v572_v38 = vsub.f32 %v563_v45, %v568_v44 }
 0x425   :  { %v576_v4 = vmul.f32 1.442695, %v573_v21 }
 0x426   :  { %v574_v60 = vmul.f32 1.442695, %v572_v38 }
 0x427   :  { %3774 = vpow2.f32 %v576_v4 }
 0x428   :  { %3776 = vpow2.f32 %v574_v60 }
 0x431   :  { %v3775_v18 = vpop.eup %3774 }
 0x432   :  { %v3777_v58 = vpop.eup %3776  ;;  %v581_v13 = vsel %vm565_vm11, %v3775_v18, 0.0 }
 0x433   :  { %582 = vadd.xlane.f32.xlu1 %v581_v13  ;;  %v578_v19 = vsel %vm565_vm11, %v3777_v58, 0.0 }
 0x434   :  { %579 = vadd.xlane.f32.xlu0 %v578_v19 }
 0x444   :  { %3701 = vrot.lane.b32.xlu1 %v4171_v57, %s3916_s11 }
 0x448   :  { %675 = vrot.lane.b32.xlu1 %v4165_v32, %s3917_s12 }
 0x44a   :  { %3696 = vrot.lane.b32.xlu0 %v4171_v57, %s3918_s13 }
 0x44e   :  { %677 = vrot.lane.b32.xlu0 %v4163_v37, %s3917_s12 }
 0x4c0   :  { %v583_v49 = vpop.xlane.xlu1 %582 }
 0x4c1   :  { %3778 = vrcp.f32 %v583_v49  ;;  %v580_v59 = vpop.xlane.xlu0 %579 }
 0x4c2   :  { %3780 = vrcp.f32 %v580_v59 }
 0x4c4   :  { %v3702_v62 = vpop.permute.xlu1 %3701 }
 0x4c5   :  { %v3697_v46 = vpop.permute.xlu0 %3696  ;;  %v3704_v63 = vunpack.i.h.bf16 %v3702_v62  ;;  %v3703_v22 = vunpack.i.l.bf16 %v3702_v62 }
 0x4c6   :  { %v3699_v47 = vunpack.i.h.bf16 %v3697_v46  ;;  %v3698_v10 = vunpack.i.l.bf16 %v3697_v46 }
 0x4c7   :  { %v3523_v25 = vpack.c.bf16 %v3704_v63, %v3703_v22 }
 0x4c8   :  { %v3519_v20 = vpack.c.bf16 %v3699_v47, %v3698_v10  ;;  %v676_v27 = vpop.permute.xlu1 %675 }
 0x4c9   :  { %v678_v54 = vpop.permute.xlu0 %677 }
 0x4ca   :  { %3520 = vmatprep.subr.bf16.mxu1 %v3519_v20 }
 0x4cb   :  { %v3779_v14 = vpop.eup %3778  ;;  %3522 = vmatpush3.bf16.msra.mxu1 %v3519_v20 }
 0x4cc   :  { %v3781_v26 = vpop.eup %3780  ;;  %3525 = vmatprep.subr.msk.bf16.mxu1 %vm4177_vm10, %v3523_v25  ;;  %v587_v61 = vmul.f32 %v3779_v14, %v3775_v18 }
 0x4cd   :  { %v586_v48 = vmul.f32 %v3781_v26, %v3777_v58 }
 0x4cf   :  { %3300 = vmatprep.mubr.msk.f32.mxu1 %vm565_vm11, %v586_v48 }
 0x4d0   :  { %3301 = vmatmul.mubr.msk.f32.vlgmr.msra.gmra.mrb[2].mxu1 %vm565_vm11, %v587_v61 }
 0x4d1   :  { %3307 = vmatprep.mubr.msk.f32.mxu1 %vm477_vm9, %v676_v27 }
 0x4d4   :  { %3528 = vmatpush3.bf16.xpose.msk.msra.mxu1 %vm4177_vm10, %v3523_v25 }
 0x4db   :  { %3308 = vmatmul.mubr.msk.f32.vlgmr.msra.gmra.mrb[4].mxu1 %vm477_vm9, %v678_v54 }
 0x5a3   :  { %v4219_v41 = vpop.f32.mrb[2].mxu1 }
 0x5a4   :  { %v4221_v33 = vpop.f32.mrb[3].mxu1 }
 0x5ae   :  { %v3309_v34 = vpop.f32.mrb[4].mxu1 }
 0x5af   :  { %v767_v15 = vmul.f32 0.35355338, %v3309_v34  ;;  %v757_v35 = vpop.f32.mrb[5].mxu1 }
 0x5b0   :  { %v766_v50 = vmul.f32 0.35355338, %v757_v35 }
 0x5b1   :  { %v769_v56 = vadd.f32 %v767_v15, %v4190_v8 }
 0x5b2   :  { %v768_v24 = vadd.f32 %v766_v50, %v4195_v36 }
 0x5b3   :  { %v773_v40 = vsel %vm565_vm11, %v769_v56, -inf }
 0x5b4   :  { %774 = vmax.xlane.f32.xlu0 %v773_v40  ;;  %v770_v16 = vsel %vm565_vm11, %v768_v24, -inf }
 0x5b5   :  { %771 = vmax.xlane.f32.xlu1 %v770_v16 }
 0x641   :  { %v775_v55 = vpop.xlane.xlu0 %774 }
 0x642   :  { %v777_v52 = vsub.f32 %v769_v56, %v775_v55  ;;  %v772_v9 = vpop.xlane.xlu1 %771 }
 0x643   :  { %v776_v53 = vsub.f32 %v768_v24, %v772_v9 }
 0x644   :  { %v780_v29 = vmul.f32 1.442695, %v777_v52 }
 0x645   :  { %v778_v39 = vmul.f32 1.442695, %v776_v53 }
 0x646   :  { %3782 = vpow2.f32 %v780_v29 }
 0x647   :  { %3784 = vpow2.f32 %v778_v39 }
 0x650   :  { %v3783_v0 = vpop.eup %3782 }
 0x651   :  { %v3785_v2 = vpop.eup %3784  ;;  %v785_v17 = vsel %vm565_vm11, %v3783_v0, 0.0 }
 0x652   :  { %786 = vadd.xlane.f32.xlu1 %v785_v17  ;;  %v782_v42 = vsel %vm565_vm11, %v3785_v2, 0.0 }
 0x653   :  { %783 = vadd.xlane.f32.xlu0 %v782_v42 }
 0x663   :  { %3711 = vrot.lane.b32.xlu1 %v4171_v57, %s3919_s14 }
 0x667   :  { %879 = vrot.lane.b32.xlu1 %v4165_v32, %s3920_s15 }
 0x669   :  { %3706 = vrot.lane.b32.xlu0 %v4171_v57, %s3921_s16 }
 0x66d   :  { %881 = vrot.lane.b32.xlu0 %v4163_v37, %s3920_s15 }
 0x6df   :  { %v787_v23 = vpop.xlane.xlu1 %786 }
 0x6e0   :  { %3786 = vrcp.f32 %v787_v23  ;;  %v784_v28 = vpop.xlane.xlu0 %783 }
 0x6e1   :  { %3788 = vrcp.f32 %v784_v28 }
 0x6e3   :  { %v3712_v31 = vpop.permute.xlu1 %3711 }
 0x6e4   :  { %v3707_v45 = vpop.permute.xlu0 %3706  ;;  %v3714_v12 = vunpack.i.h.bf16 %v3712_v31  ;;  %v3713_v3 = vunpack.i.l.bf16 %v3712_v31 }
 0x6e5   :  { %v3709_v43 = vunpack.i.h.bf16 %v3707_v45  ;;  %v3708_v21 = vunpack.i.l.bf16 %v3707_v45 }
 0x6e6   :  { %v3533_v38 = vpack.c.bf16 %v3714_v12, %v3713_v3 }
 0x6e7   :  { %v3529_v44 = vpack.c.bf16 %v3709_v43, %v3708_v21  ;;  %v880_v13 = vpop.permute.xlu1 %879 }
 0x6e8   :  { %v882_v19 = vpop.permute.xlu0 %881 }
 0x6e9   :  { %3530 = vmatprep.subr.bf16.mxu0 %v3529_v44 }
 0x6ea   :  { %v3787_v4 = vpop.eup %3786  ;;  %3532 = vmatpush3.bf16.msra.mxu0 %v3529_v44 }
 0x6eb   :  { %v3789_v60 = vpop.eup %3788  ;;  %3535 = vmatprep.subr.msk.bf16.mxu0 %vm4177_vm10, %v3533_v38  ;;  %v791_v58 = vmul.f32 %v3787_v4, %v3783_v0 }
 0x6ec   :  { %v790_v18 = vmul.f32 %v3789_v60, %v3785_v2 }
 0x6ee   :  { %3314 = vmatprep.mubr.msk.f32.mxu0 %vm565_vm11, %v790_v18 }
 0x6ef   :  { %3315 = vmatmul.mubr.msk.f32.vlgmr.msra.gmra.mrb[2].mxu0 %vm565_vm11, %v791_v58 }
 0x6f0   :  { %3321 = vmatprep.mubr.msk.f32.mxu0 %vm477_vm9, %v880_v13 }
 0x6f3   :  { %3538 = vmatpush3.bf16.xpose.msk.msra.mxu0 %vm4177_vm10, %v3533_v38 }
 0x6fa   :  { %3322 = vmatmul.mubr.msk.f32.vlgmr.msra.gmra.mrb[4].mxu0 %vm477_vm9, %v882_v19 }
 0x7c2   :  { %v4245_v49 = vpop.f32.mrb[2].mxu0 }
 0x7c3   :  { %v4247_v59 = vpop.f32.mrb[3].mxu0 }
 0x7cd   :  { %v3323_v62 = vpop.f32.mrb[4].mxu0 }
 0x7ce   :  { %v971_v46 = vmul.f32 0.35355338, %v3323_v62  ;;  %v961_v63 = vpop.f32.mrb[5].mxu0 }
 0x7cf   :  { %v970_v22 = vmul.f32 0.35355338, %v961_v63 }
 0x7d0   :  { %v973_v47 = vadd.f32 %v971_v46, %v4190_v8 }
 0x7d1   :  { %v972_v10 = vadd.f32 %v970_v22, %v4195_v36 }
 0x7d2   :  { %v977_v20 = vsel %vm565_vm11, %v973_v47, -inf }
 0x7d3   :  { %978 = vmax.xlane.f32.xlu0 %v977_v20  ;;  %v974_v25 = vsel %vm565_vm11, %v972_v10, -inf }
 0x7d4   :  { %975 = vmax.xlane.f32.xlu1 %v974_v25 }
 0x860   :  { %v979_v14 = vpop.xlane.xlu0 %978 }
 0x861   :  { %v981_v26 = vsub.f32 %v973_v47, %v979_v14  ;;  %v976_v48 = vpop.xlane.xlu1 %975 }
 0x862   :  { %v980_v61 = vsub.f32 %v972_v10, %v976_v48 }
 0x863   :  { %v984_v27 = vmul.f32 1.442695, %v981_v26 }
 0x864   :  { %v982_v54 = vmul.f32 1.442695, %v980_v61 }
 0x865   :  { %3790 = vpow2.f32 %v984_v27  ;;  %v372_v27 = vld [vmem:[#allocation2 + $0xb0] sm:$0xff] }
 0x866   :  { %3792 = vpow2.f32 %v982_v54  ;;  %v373_v54 = vld [vmem:[#allocation2 + $0xb8] sm:$0xff] }
 0x86f   :  { %v3791_v34 = vpop.eup %3790 }
 0x870   :  { %v3793_v15 = vpop.eup %3792  ;;  %v989_v35 = vsel %vm565_vm11, %v3791_v34, 0.0 }
 0x871   :  { %990 = vadd.xlane.f32.xlu1 %v989_v35  ;;  %v986_v50 = vsel %vm565_vm11, %v3793_v15, 0.0 }
 0x872   :  { %987 = vadd.xlane.f32.xlu0 %v986_v50 }
 0x882   :  { %3721 = vrot.lane.b32.xlu1 %v4171_v57, %s3922_s17 }
 0x886   :  { %1083 = vrot.lane.b32.xlu1 %v4165_v32, %s3923_s18 }
 0x888   :  { %3716 = vrot.lane.b32.xlu0 %v4171_v57, %s3924_s19 }
 0x88c   :  { %1085 = vrot.lane.b32.xlu0 %v4163_v37, %s3923_s18 }
 0x8fe   :  { %v991_v56 = vpop.xlane.xlu1 %990 }
 0x8ff   :  { %3794 = vrcp.f32 %v991_v56  ;;  %v988_v24 = vpop.xlane.xlu0 %987 }
 0x900   :  { %3796 = vrcp.f32 %v988_v24 }
 0x902   :  { %v3722_v40 = vpop.permute.xlu1 %3721 }
 0x903   :  { %v3717_v16 = vpop.permute.xlu0 %3716  ;;  %v3724_v55 = vunpack.i.h.bf16 %v3722_v40  ;;  %v3723_v52 = vunpack.i.l.bf16 %v3722_v40 }
 0x904   :  { %v3719_v9 = vunpack.i.h.bf16 %v3717_v16  ;;  %v3718_v53 = vunpack.i.l.bf16 %v3717_v16 }
 0x905   :  { %v3543_v39 = vpack.c.bf16 %v3724_v55, %v3723_v52 }
 0x906   :  { %v3539_v29 = vpack.c.bf16 %v3719_v9, %v3718_v53  ;;  %v1084_v17 = vpop.permute.xlu1 %1083 }
 0x907   :  { %v1086_v42 = vpop.permute.xlu0 %1085 }
 0x908   :  { %3540 = vmatprep.subr.bf16.mxu1 %v3539_v29 }
 0x909   :  { %v3795_v32 = vpop.eup %3794  ;;  %3542 = vmatpush3.bf16.msra.mxu1 %v3539_v29 }
 0x90a   :  { %v3797_v0 = vpop.eup %3796  ;;  %3545 = vmatprep.subr.msk.bf16.mxu1 %vm4177_vm10, %v3543_v39  ;;  %v995_v2 = vmul.f32 %v3795_v32, %v3791_v34 }
 0x90b   :  { %v994_v37 = vmul.f32 %v3797_v0, %v3793_v15  ;;  %v374_v15 = vld [vmem:[#allocation2 + $0xc0] sm:$0xff] }
 0x90c   :  { %v3557_v35 = vpack.c.bf16 %v374_v15, %v373_v54 }
 0x90d   :  { %3328 = vmatprep.mubr.msk.f32.mxu1 %vm565_vm11, %v994_v37 }
 0x90e   :  { %3329 = vmatmul.mubr.msk.f32.vlgmr.msra.gmra.mrb[6].mxu1 %vm565_vm11, %v995_v2 }
 0x90f   :  { %3335 = vmatprep.mubr.msk.f32.mxu1 %vm477_vm9, %v1084_v17 }
 0x912   :  { %3548 = vmatpush3.bf16.xpose.msk.msra.mxu1 %vm4177_vm10, %v3543_v39 }
 0x919   :  { %3336 = vmatmul.mubr.msk.f32.vlgmr.msra.gmra.mrb[8].mxu1 %vm477_vm9, %v1086_v42 }
 0x9e1   :  { %v3330_v23 = vpop.f32.mrb[6].mxu1 }
 0x9e2   :  { %v1074_v28 = vpop.f32.mrb[7].mxu1 }
 0x9ec   :  { %v3337_v31 = vpop.f32.mrb[8].mxu1 }
 0x9ed   :  { %v1175_v45 = vmul.f32 0.35355338, %v3337_v31  ;;  %v1165_v12 = vpop.f32.mrb[9].mxu1 }
 0x9ee   :  { %v1174_v3 = vmul.f32 0.35355338, %v1165_v12 }
 0x9ef   :  { %v1177_v43 = vadd.f32 %v1175_v45, %v4190_v8 }
 0x9f0   :  { %v1176_v21 = vadd.f32 %v1174_v3, %v4195_v36 }
 0x9f1   :  { %v1181_v44 = vsel %vm565_vm11, %v1177_v43, -inf }
 0x9f2   :  { %1182 = vmax.xlane.f32.xlu0 %v1181_v44  ;;  %v1178_v38 = vsel %vm565_vm11, %v1176_v21, -inf }
 0x9f3   :  { %1179 = vmax.xlane.f32.xlu1 %v1178_v38 }
 0xa7f   :  { %v1183_v4 = vpop.xlane.xlu0 %1182 }
 0xa80   :  { %v1185_v60 = vsub.f32 %v1177_v43, %v1183_v4  ;;  %v1180_v18 = vpop.xlane.xlu1 %1179 }
 0xa81   :  { %v1184_v58 = vsub.f32 %v1176_v21, %v1180_v18 }
 0xa82   :  { %v1188_v13 = vmul.f32 1.442695, %v1185_v60 }
 0xa83   :  { %v1186_v19 = vmul.f32 1.442695, %v1184_v58  ;;  %v376_v58 = vld [vmem:[#allocation2 + $0xd0] sm:$0xff] }
 0xa84   :  { %3798 = vpow2.f32 %v1188_v13  ;;  %v377_v13 = vld [vmem:[#allocation2 + $0xd8] sm:$0xff] }
 0xa85   :  { %3800 = vpow2.f32 %v1186_v19 }
 0xa8e   :  { %v3799_v62 = vpop.eup %3798 }
 0xa8f   :  { %v3801_v46 = vpop.eup %3800  ;;  %v1193_v63 = vsel %vm565_vm11, %v3799_v62, 0.0 }
 0xa90   :  { %1194 = vadd.xlane.f32.xlu1 %v1193_v63  ;;  %v1190_v22 = vsel %vm565_vm11, %v3801_v46, 0.0 }
 0xa91   :  { %1191 = vadd.xlane.f32.xlu0 %v1190_v22 }
 0xaa1   :  { %1289 = vrot.lane.b32.xlu1 %v4247_v59, %s3914_s26 }
 0xaa5   :  { %1291 = vrot.lane.b32.xlu1 %v4245_v49, %s3914_s26 }
 0xaa7   :  { %3726 = vrot.lane.b32.xlu0 %v4171_v57, %s3925_s20  ;;  %v371_v57 = vld [vmem:[#allocation2 + $0xa8] sm:$0xff] }
 0xaa8   :  { %v3553_v34 = vpack.c.bf16 %v372_v27, %v371_v57 }
 0xaa9   :  { %1299 = vrot.lane.b32.xlu1 %v3330_v23, %s3926_s21 }
 0xaab   :  { %1297 = vrot.lane.b32.xlu0 %v1074_v28, %s3926_s21 }
 0xb1d   :  { %v1195_v47 = vpop.xlane.xlu1 %1194 }
 0xb1e   :  { %3802 = vrcp.f32 %v1195_v47  ;;  %v1192_v10 = vpop.xlane.xlu0 %1191 }
 0xb1f   :  { %3804 = vrcp.f32 %v1192_v10 }
 0xb21   :  { %v1290_v24 = vpop.permute.xlu1 %1289 }
 0xb22   :  { %v3727_v20 = vpop.permute.xlu0 %3726  ;;  %v1311_v52 = vsel %vm477_vm9, %v4221_v33, %v1290_v24  ;;  %v1321_v33 = vrot.slane %v4159_v51, %v3978_v7  ;;  %v381_v24 = vld [vmem:[#allocation2 + $0xf8] sm:$0xff] }
 0xb23   :  { %v3729_v25 = vunpack.i.h.bf16 %v3727_v20  ;;  %v3728_v14 = vunpack.i.l.bf16 %v3727_v20 }
 0xb25   :  { %v3549_v59 = vpack.c.bf16 %v3729_v25, %v3728_v14  ;;  %v1292_v40 = vpop.permute.xlu1 %1291  ;;  %v1434_v14 = vsub.s32 2, %v3972_v5 }
 0xb26   :  { %v1298_v55 = vpop.permute.xlu0 %1297  ;;  %v1312_v53 = vsel %vm477_vm9, %v4219_v41, %v1292_v40 }
 0xb27   :  { %3550 = vmatprep.subr.bf16.mxu0 %v3549_v59  ;;  %v1313_v29 = vsel %vm565_vm11, %v1311_v52, %v1298_v55  ;;  %v383_v52 = vld [vmem:[#allocation2 + $0x108] sm:$0xff] }
 0xb28   :  { %v3803_v26 = vpop.eup %3802  ;;  %3552 = vmatpush3.bf16.msra.mxu0 %v3549_v59  ;;  %v1440_v59 = vsub.s32 3, %v3972_v5 }
 0xb29   :  { %v3805_v49 = vpop.eup %3804  ;;  %v1199_v61 = vmul.f32 %v3803_v26, %v3799_v62  ;;  %3554 = vmatprep.subr.bf16.mxu0 %v3553_v34  ;;  %v1300_v16 = vpop.permute.xlu1 %1299  ;;  %v378_v62 = vld [vmem:[#allocation2 + $0xe0] sm:$0xff]  ;;  %v1435_v26 = vrot.slane %v4159_v51, %v1434_v14 }
 0xb2a   :  { %v1198_v48 = vmul.f32 %v3805_v49, %v3801_v46  ;;  %v1314_v32 = vsel %vm565_vm11, %v1312_v53, %v1300_v16  ;;  %v3565_v46 = vpack.c.bf16 %v378_v62, %v377_v13  ;;  %v382_v16 = vld [vmem:[#allocation2 + $0x100] sm:$0xff] }
 0xb2b   :  { %v3573_v55 = vpack.c.bf16 %v382_v16, %v381_v24  ;;  %v1674_v24 = vld [vmem:[#allocation2 + $0x138] sm:$0xff] }
 0xb2c   :  { %3342 = vmatprep.mubr.msk.f32.mxu0 %vm565_vm11, %v1198_v48 }
 0xb2d   :  { %3343 = vmatmul.mubr.msk.f32.vlgmr.msra.gmra.mrb[6].mxu0 %vm565_vm11, %v1199_v61  ;;  %v1441_v61 = vrot.slane %v4159_v51, %v1440_v59 }
 0xb2e   :  { %3556 = vmatpush3.bf16.msra.mxu0 %v3553_v34 }
 0xb2f   :  { %3558 = vmatprep.subr.bf16.mxu0 %v3557_v35 }
 0xb32   :  { %3560 = vmatpush3.bf16.msra.mxu0 %v3557_v35 }
 0xc00   :  { %v3344_v50 = vpop.f32.mrb[6].mxu0 }
 0xc01   :  { %1307 = vrot.lane.b32.xlu1 %v3344_v50, %s3927_s22  ;;  %v1278_v56 = vpop.f32.mrb[7].mxu0  ;;  %v379_v50 = vld [vmem:[#allocation2 + $0xe8] sm:$0xff] }
 0xc02   :  { %1305 = vrot.lane.b32.xlu0 %v1278_v56, %s3927_s22  ;;  %v380_v56 = vld [vmem:[#allocation2 + $0xf0] sm:$0xff] }
 0xc03   :  { %v3569_v40 = vpack.c.bf16 %v380_v56, %v379_v50 }
 0xc05   :  { %3570 = vmatprep.subr.bf16.mxu0 %v3569_v40 }
 0xc73   :  { %v1308_v9 = vpop.permute.xlu1 %1307 }
 0xc74   :  { %v1306_v39 = vpop.permute.xlu0 %1305  ;;  %v1317_v37 = vsel %vm1315_vm12, %v1314_v32, %v1308_v9  ;;  %v384_v9 = vld [vmem:[#allocation2 + $0x110] sm:$0xff] }
 0xc75   :  { %v1316_v0 = vsel %vm1315_vm12, %v1313_v29, %v1306_v39  ;;  %v3577_v53 = vpack.c.bf16 %v384_v9, %v383_v52  ;;  %v385_v29 = vld [vmem:[#allocation2 + $0x118] sm:$0xff]  ;;  %v386_v39 = vld [vmem:[#allocation2 + $0x120] sm:$0xff] }
 0xc76   :  { %3353 = vmatprep.mubr.msk.f32.mxu0 %vm112_vm1, %v1316_v0  ;;  %v3581_v32 = vpack.c.bf16 %v386_v39, %v385_v29  ;;  %v1446_v0 = vsub.s32 4, %v3972_v5 }
 0xc77   :  { %3354 = vmatmul.mubr.msk.f32.vlgmr.msra.gmra.mrb[8].mxu0 %vm112_vm1, %v1317_v37 }
 0xc78   :  { %3572 = vmatpush3.bf16.msra.mxu0 %v3569_v40  ;;  %v1447_v37 = vrot.slane %v4159_v51, %v1446_v0  ;;  %v1675_v40 = vld [vmem:[#allocation2 + $0x140] sm:$0xff] }
 0xc79   :  { %3574 = vmatprep.subr.bf16.mxu0 %v3573_v55 }
 0xc7c   :  { %3576 = vmatpush3.bf16.msra.mxu0 %v3573_v55  ;;  %v1676_v55 = vld [vmem:[#allocation2 + $0x148] sm:$0xff] }
 0xc7d   :  { %3578 = vmatprep.subr.bf16.mxu0 %v3577_v53  ;;  %v3589_v52 = vpack.c.bf16 %v1676_v55, %v1675_v40 }
 0xc80   :  { %3580 = vmatpush3.bf16.msra.mxu0 %v3577_v53 }
 0xc81   :  { %3582 = vmatprep.subr.bf16.mxu0 %v3581_v32 }
 0xc84   :  { %3584 = vmatpush3.bf16.msra.mxu0 %v3581_v32 }
 0xd4a   :  { %v3355_v2 = vpop.f32.mrb[8].mxu0 }
 0xd4b   :  { %v1400_v17 = vadd.f32 %v3355_v2, %v1321_v33  ;;  %v1394_v42 = vpop.f32.mrb[9].mxu0 }
 0xd4c   :  { %v1395_v41 = vadd.f32 %v1394_v42, %v1321_v33 }
 0xd4d   :  { %v1404_v23 = vadd.f32 %v1400_v17, %v4155_v11 }
 0xd4e   :  { %v1403_v28 = vadd.f32 %v1395_v41, %v4128_v30  ;;  %v375_v30 = vld [vmem:[#allocation2 + $0xc8] sm:$0xff] }
 0xd4f   :  { %v1408_v31 = vsel %vm112_vm1, %v1404_v23, 0.0  ;;  %v3561_v19 = vpack.c.bf16 %v376_v58, %v375_v30 }
 0xd50   :  { %1409 = vadd.xlane.f32.xlu1 %v1408_v31  ;;  %v1405_v45 = vsel %vm112_vm1, %v1403_v28, 0.0 }
 0xd51   :  { %1406 = vadd.xlane.f32.xlu0 %v1405_v45  ;;  %3562 = vmatprep.subr.bf16.mxu1 %v3561_v19 }
 0xd52   :  { %3564 = vmatpush3.bf16.msra.mxu1 %v3561_v19  ;;  %v1549_v19 = vsub.s32 5, %v3972_v5 }
 0xd53   :  { %3566 = vmatprep.subr.bf16.mxu1 %v3565_v46 }
 0xd54   :  { %v1550_v62 = vrot.slane %v4159_v51, %v1549_v19 }
 0xd56   :  { %3568 = vmatpush3.bf16.msra.mxu1 %v3565_v46 }
 0xddd   :  { %v1410_v12 = vpop.xlane.xlu1 %1409 }
 0xdde   :  { %v1413_v3 = vmul.f32 0.03125, %v1410_v12  ;;  %v1407_v43 = vpop.xlane.xlu0 %1406 }
 0xddf   :  { %v1412_v21 = vmul.f32 0.03125, %v1407_v43 }
 0xde0   :  { %v1415_v44 = vsub.f32 %v1404_v23, %v1413_v3 }
 0xde1   :  { %v1414_v38 = vsub.f32 %v1403_v28, %v1412_v21 }
 0xde2   :  { %v1417_v18 = vmul.f32 %v1415_v44, %v1415_v44 }
 0xde3   :  { %v1416_v4 = vmul.f32 %v1414_v38, %v1414_v38 }
 0xde4   :  { %v1421_v11 = vsel %vm112_vm1, %v1417_v18, 0.0 }
 0xde5   :  { %v1418_v60 = vsel %vm112_vm1, %v1416_v4, 0.0 }
 0xde6   :  { %1419 = vadd.xlane.f32.xlu0 %v1418_v60 }
 0xdea   :  { %1422 = vadd.xlane.f32.xlu0 %v1421_v11 }
 0xe73   :  { %v1420_v63 = vpop.xlane.xlu0 %1419 }
 0xe74   :  { %v1424_v22 = vmul.f32 0.03125, %v1420_v63 }
 0xe76   :  { %v1426_v47 = vadd.f32 1e-12, %v1424_v22 }
 0xe77   :  { %v1423_v10 = vpop.xlane.xlu0 %1422 }
 0xe78   :  { %3806 = vrsqrt.f32 %v1426_v47  ;;  %v1425_v20 = vmul.f32 0.03125, %v1423_v10 }
 0xe7a   :  { %v1427_v25 = vadd.f32 1e-12, %v1425_v20 }
 0xe7c   :  { %3808 = vrsqrt.f32 %v1427_v25 }
 0xe82   :  { %v3807_v49 = vpop.eup %3806 }
 0xe83   :  { %v1430_v48 = vmul.f32 %v3807_v49, %v1414_v38 }
 0xe85   :  { %v1436_v57 = vmul.f32 %v1435_v26, %v1430_v48 }
 0xe86   :  { %v3809_v27 = vpop.eup %3808 }
 0xe87   :  { %v1431_v54 = vmul.f32 %v3809_v27, %v1415_v44  ;;  %v1442_v34 = vadd.f32 %v1441_v61, %v1436_v57 }
 0xe89   :  { %v1437_v15 = vmul.f32 %v1435_v26, %v1431_v54  ;;  %3364 = vmatprep.mubr.msk.f32.mxu1 %vm112_vm1, %v1442_v34 }
 0xe8b   :  { %v1443_v35 = vadd.f32 %v1441_v61, %v1437_v15 }
 0xe8d   :  { %3365 = vmatmul.mubr.msk.f32.vlgmr.msra.gmra.mrb[10].mxu1 %vm112_vm1, %v1443_v35 }
 0xf60   :  { %v3366_v33 = vpop.f32.mrb[10].mxu1 }
 0xf61   :  { %v1526_v2 = vadd.f32 %v3366_v33, %v1447_v37  ;;  %v1520_v17 = vpop.f32.mrb[11].mxu1  ;;  %v1663_v33 = vsub.s32 6, %v3972_v5 }
 0xf62   :  { %v1521_v42 = vadd.f32 %v1520_v17, %v1447_v37 }
 0xf63   :  { %v1532_v41 = vmul.f32 0.044715, %v1526_v2  ;;  %v1530_v30 = vmul.f32 0.5, %v1526_v2  ;;  %v1664_v17 = vrot.slane %v4159_v51, %v1663_v33 }
 0xf64   :  { %v1531_v23 = vmul.f32 0.044715, %v1521_v42  ;;  %v1529_v18 = vmul.f32 0.5, %v1521_v42 }
 0xf65   :  { %v1534_v28 = vmul.f32 %v1532_v41, %v1526_v2 }
 0xf66   :  { %v1533_v31 = vmul.f32 %v1531_v23, %v1521_v42 }
 0xf67   :  { %v1536_v45 = vmul.f32 %v1534_v28, %v1526_v2 }
 0xf68   :  { %v1535_v12 = vmul.f32 %v1533_v31, %v1521_v42 }
 0xf69   :  { %v1538_v3 = vadd.f32 %v1536_v45, %v1526_v2  ;;  %v1669_v2 = vsub.s32 7, %v3972_v5 }
 0xf6a   :  { %v1537_v43 = vadd.f32 %v1535_v12, %v1521_v42 }
 0xf6b   :  { %v1540_v21 = vmul.f32 0.7978846, %v1538_v3  ;;  %v1670_v31 = vrot.slane %v4159_v51, %v1669_v2 }
 0xf6c   :  { %v1539_v44 = vmul.f32 0.7978846, %v1537_v43 }
 0xf6d   :  { %3810 = vtanh.f32 %v1540_v21  ;;  %v4347_v21 = vld [vmem:[#allocation2 + $0x1d0] sm:$0xff] }
 0xf6e   :  { %3812 = vtanh.f32 %v1539_v44  ;;  %v1697_v44 = vrot.slane %v4347_v21, %v3975_v6 }
 0xf77   :  { %v3811_v38 = vpop.eup %3810 }
 0xf78   :  { %v3813_v4 = vpop.eup %3812  ;;  %v1544_v60 = vadd.f32 1.0, %v3811_v38 }
 0xf79   :  { %v1543_v11 = vadd.f32 1.0, %v3813_v4 }
 0xf7a   :  { %v1546_v13 = vmul.f32 %v1544_v60, %v1530_v30 }
 0xf7b   :  { %v1545_v58 = vmul.f32 %v1543_v11, %v1529_v18 }
 0xf7d   :  { %3383 = vmatprep.mubr.msk.f32.mxu0 %vm1551_vm13, %v1545_v58 }
 0xf7e   :  { %3384 = vmatmul.mubr.msk.f32.vlgmr.msra.gmra.mrb[10].mxu0 %vm1551_vm13, %v1546_v13 }
0x1051   :  { %v3385_v46 = vpop.f32.mrb[10].mxu0 }
0x1052   :  { %v1630_v63 = vadd.f32 %v3385_v46, %v1550_v62  ;;  %v1624_v22 = vpop.f32.mrb[11].mxu0 }
0x1053   :  { %v1625_v47 = vadd.f32 %v1624_v22, %v1550_v62 }
0x1054   :  { %v1634_v10 = vadd.f32 %v1630_v63, %v1443_v35 }
0x1055   :  { %v1633_v20 = vadd.f32 %v1625_v47, %v1442_v34  ;;  %v1673_v34 = vld [vmem:[#allocation2 + $0x130] sm:$0xff] }
0x1056   :  { %v1638_v25 = vsel %vm112_vm1, %v1634_v10, 0.0  ;;  %v3585_v16 = vpack.c.bf16 %v1674_v24, %v1673_v34 }
0x1057   :  { %1639 = vadd.xlane.f32.xlu0 %v1638_v25  ;;  %v1635_v26 = vsel %vm112_vm1, %v1633_v20, 0.0 }
0x1058   :  { %1636 = vadd.xlane.f32.xlu1 %v1635_v26  ;;  %3586 = vmatprep.subr.bf16.mxu1 %v3585_v16 }
0x1059   :  { %3588 = vmatpush3.bf16.msra.mxu1 %v3585_v16 }
0x105a   :  { %3590 = vmatprep.subr.bf16.mxu1 %v3589_v52 }
0x105d   :  { %3592 = vmatpush3.bf16.msra.mxu1 %v3589_v52 }
0x10e4   :  { %v1640_v49 = vpop.xlane.xlu0 %1639 }
0x10e5   :  { %v1642_v48 = vmul.f32 0.03125, %v1640_v49  ;;  %v1637_v61 = vpop.xlane.xlu1 %1636 }
0x10e6   :  { %v1641_v57 = vmul.f32 0.03125, %v1637_v61 }
0x10e7   :  { %v1644_v27 = vsub.f32 %v1634_v10, %v1642_v48 }
0x10e8   :  { %v1643_v54 = vsub.f32 %v1633_v20, %v1641_v57 }
0x10e9   :  { %v1646_v15 = vmul.f32 %v1644_v27, %v1644_v27 }
0x10ea   :  { %v1645_v50 = vmul.f32 %v1643_v54, %v1643_v54 }
0x10eb   :  { %v1650_v56 = vsel %vm112_vm1, %v1646_v15, 0.0 }
0x10ec   :  { %1651 = vadd.xlane.f32.xlu0 %v1650_v56  ;;  %v1647_v35 = vsel %vm112_vm1, %v1645_v50, 0.0 }
0x10ed   :  { %1648 = vadd.xlane.f32.xlu1 %v1647_v35 }
0x1179   :  { %v1652_v9 = vpop.xlane.xlu0 %1651 }
0x117a   :  { %v1654_v53 = vmul.f32 0.03125, %v1652_v9  ;;  %v1649_v29 = vpop.xlane.xlu1 %1648 }
0x117b   :  { %v1653_v39 = vmul.f32 0.03125, %v1649_v29 }
0x117c   :  { %v1656_v32 = vadd.f32 1e-12, %v1654_v53 }
0x117d   :  { %v1655_v37 = vadd.f32 1e-12, %v1653_v39 }
0x117e   :  { %3814 = vrsqrt.f32 %v1656_v32 }
0x117f   :  { %3816 = vrsqrt.f32 %v1655_v37 }
0x1188   :  { %v3815_v42 = vpop.eup %3814 }
0x1189   :  { %v3817_v41 = vpop.eup %3816  ;;  %v1660_v23 = vmul.f32 %v3815_v42, %v1644_v27 }
0x118a   :  { %v1659_v28 = vmul.f32 %v3817_v41, %v1643_v54 }
0x118b   :  { %v1666_v45 = vmul.f32 %v1664_v17, %v1660_v23 }
0x118c   :  { %v1665_v12 = vmul.f32 %v1664_v17, %v1659_v28 }
0x118d   :  { %v4341_v43 = vadd.f32 %v1670_v31, %v1666_v45 }
0x118e   :  { %v4339_v3 = vadd.f32 %v1670_v31, %v1665_v12 }
0x1190   :  { %3394 = vmatprep.mubr.msk.f32.mxu1 %vm112_vm1, %v4339_v3 }
0x1191   :  { %3395 = vmatmul.mubr.msk.f32.vlgmr.msra.gmra.mrb[12].mxu1 %vm112_vm1, %v4341_v43 }
0x1264   :  { %v3396_v38 = vpop.f32.mrb[12].mxu1 }
0x1265   :  { %v4351_v4 = vadd.f32 %v3396_v38, %v1697_v44  ;;  %v1770_v51 = vpop.f32.mrb[13].mxu1 }
0x1266   :  { %v4353_v60 = vadd.f32 %v1770_v51, %v1697_v44 }
0x1268   :  { %3401 = vmatprep.mubr.msk.f32.mxu1 %vm477_vm9, %v4353_v60  ;;  %v4359_v18 = vpack.i.bf16 %v4351_v4, %v4353_v60 }
0x126a   :  { %3736 = vrot.lane.b32.xlu0 %v4359_v18, %s3916_s11  ;;  %3731 = vrot.lane.b32.xlu1 %v4359_v18, %s3915_s1 }
0x126e   :  { %1981 = vrot.lane.b32.xlu1 %v4353_v60, %s3917_s12 }
0x1272   :  { %1983 = vrot.lane.b32.xlu1 %v4351_v4, %s3917_s12 }
0x12dc   :  { %v3737_v11 = vpop.permute.xlu0 %3736  ;;  %v3732_v30 = vpop.permute.xlu1 %3731 }
0x12dd   :  { %v3739_v58 = vunpack.i.h.bf16 %v3737_v11  ;;  %v3738_v13 = vunpack.i.l.bf16 %v3737_v11  ;;  %v3734_v62 = vunpack.i.h.bf16 %v3732_v30  ;;  %v3733_v46 = vunpack.i.l.bf16 %v3732_v30 }
0x12df   :  { %v3593_v63 = vpack.c.bf16 %v3734_v62, %v3733_v46  ;;  %v3603_v22 = vpack.c.bf16 %v3739_v58, %v3738_v13 }
0x12e0   :  { %v1982_v47 = vpop.permute.xlu1 %1981 }
0x12e1   :  { %3595 = vmatprep.subr.msk.bf16.mxu1 %vm4177_vm10, %v3593_v63 }
0x12e2   :  { %3598 = vmatpush3.bf16.xpose.msk.msra.mxu1 %vm4177_vm10, %v3593_v63 }
0x12e3   :  { %3605 = vmatprep.subr.msk.bf16.mxu1 %vm4177_vm10, %v3603_v22 }
0x12e4   :  { %v1984_v10 = vpop.permute.xlu1 %1983 }
0x12e9   :  { %3402 = vmatmul.mubr.msk.f32.vlgmr.msra.gmra.mrb[14].mxu1 %vm477_vm9, %v4351_v4 }
0x12ea   :  { %3608 = vmatpush3.bf16.xpose.msk.msra.mxu1 %vm4177_vm10, %v3603_v22  ;;  %3415 = vmatprep.mubr.msk.f32.mxu1 %vm477_vm9, %v1982_v47 }
0x12f1   :  { %3416 = vmatmul.mubr.msk.f32.vlgmr.msra.gmra.mrb[16].mxu1 %vm477_vm9, %v1984_v10 }
0x13bc   :  { %v3403_v20 = vpop.f32.mrb[14].mxu1 }
0x13bd   :  { %v1869_v25 = vmul.f32 0.35355338, %v3403_v20  ;;  %v1859_v26 = vpop.f32.mrb[15].mxu1 }
0x13be   :  { %v1868_v49 = vmul.f32 0.35355338, %v1859_v26 }
0x13bf   :  { %v1871_v48 = vadd.f32 %v1869_v25, %v4190_v8 }
0x13c0   :  { %v1870_v61 = vadd.f32 %v1868_v49, %v4195_v36 }
0x13c1   :  { %v1875_v57 = vsel %vm565_vm11, %v1871_v48, -inf }
0x13c2   :  { %1876 = vmax.xlane.f32.xlu1 %v1875_v57  ;;  %v1872_v27 = vsel %vm565_vm11, %v1870_v61, -inf }
0x13c3   :  { %1873 = vmax.xlane.f32.xlu0 %v1872_v27 }
0x13c4   :  { %v3417_v54 = vpop.f32.mrb[16].mxu1 }
0x13c5   :  { %v2063_v15 = vpop.f32.mrb[17].mxu1  ;;  %v2073_v50 = vmul.f32 0.35355338, %v3417_v54 }
0x13c6   :  { %v2072_v56 = vmul.f32 0.35355338, %v2063_v15 }
0x13c7   :  { %v2075_v24 = vadd.f32 %v2073_v50, %v4190_v8 }
0x13c8   :  { %v2074_v35 = vadd.f32 %v2072_v56, %v4195_v36 }
0x13c9   :  { %v2079_v40 = vsel %vm565_vm11, %v2075_v24, -inf }
0x13ca   :  { %v2076_v34 = vsel %vm565_vm11, %v2074_v35, -inf }
0x13cb   :  { %2077 = vmax.xlane.f32.xlu0 %v2076_v34 }
0x13cf   :  { %2080 = vmax.xlane.f32.xlu0 %v2079_v40 }
0x13d3   :  { %3741 = vrot.lane.b32.xlu1 %v4359_v18, %s3918_s13 }
0x144f   :  { %v1877_v16 = vpop.xlane.xlu1 %1876 }
0x1450   :  { %v1879_v55 = vsub.f32 %v1871_v48, %v1877_v16  ;;  %v1874_v52 = vpop.xlane.xlu0 %1873 }
0x1451   :  { %v1878_v9 = vsub.f32 %v1870_v61, %v1874_v52 }
0x1452   :  { %v1882_v53 = vmul.f32 1.442695, %v1879_v55 }
0x1453   :  { %v1880_v29 = vmul.f32 1.442695, %v1878_v9  ;;  %v3742_v39 = vpop.permute.xlu1 %3741 }
0x1454   :  { %3818 = vpow2.f32 %v1882_v53  ;;  %v3744_v36 = vunpack.i.h.bf16 %v3742_v39  ;;  %v3743_v32 = vunpack.i.l.bf16 %v3742_v39  ;;  %v3862_v39 = vld [vmem:[%s4527_s2 + $0x8] sm:$0xff] }
0x1455   :  { %3820 = vpow2.f32 %v1880_v29 }
0x1456   :  { %v3599_v37 = vpack.c.bf16 %v3744_v36, %v3743_v32  ;;  %v3863_v32 = vld [vmem:[%s4527_s2] sm:$0xff]  ;;  %s3928_s2 = smov [#allocation5]  }
0x1457   :  { %s3073_s29 = sshll.u32 %s3928_s2, 4  ;;  %s3074_s29 = int_to_ptr.vmem [resolvable:$true] %s3073_s29 }
0x1458   :  { %3600 = vmatprep.subr.bf16.mxu0 %v3599_v37  ;;  %v2078_v8 = vpop.xlane.xlu0 %2077  ;;  %s3886_s30 = scalar_lea.vmem %s3074_s29, 256  ;;  %p3891_p9 = scmp.lt.s32.totalorder %s3074_s29, %s3074_s29 }
0x1459   :  { %3602 = vmatpush3.bf16.msra.mxu0 %v3599_v37  ;;  %v2082_v38 = vsub.f32 %v2074_v35, %v2078_v8  ;;  %p3887_p8 = scmp.ne.s32.totalorder %s3074_s29, %s3886_s30  ;;  %p3892_p10 = scmp.lt.s32.totalorder %s3886_s30, %s3886_s30 }
0x145b   :  { %v2084_v51 = vmul.f32 1.442695, %v2082_v38  ;;  %p3893_p11 = por %p3892_p10, %p3891_p9 }
0x145c   :  { %v2081_v17 = vpop.xlane.xlu0 %2080 }
0x145d   :  { %v2083_v42 = vsub.f32 %v2075_v24, %v2081_v17  ;;  %p3894_p12 = pnand %p3893_p11, %p3887_p8 }
0x145e   :  { %v3819_v41 = vpop.eup %3818 }
0x145f   :  { %v3821_v23 = vpop.eup %3820  ;;  %v2086_v28 = vmul.f32 1.442695, %v2083_v42  ;;  %v1887_v31 = vsel %vm565_vm11, %v3819_v41, 0.0 }
0x1460   :  { %1888 = vadd.xlane.f32.xlu0 %v1887_v31  ;;  %v1884_v45 = vsel %vm565_vm11, %v3821_v23, 0.0 }
0x1461   :  { %3822 = vpow2.f32 %v2086_v28  ;;  %1885 = vadd.xlane.f32.xlu1 %v1884_v45 }
0x1462   :  { %3824 = vpow2.f32 %v2084_v51 }
0x146b   :  { %v3823_v12 = vpop.eup %3822 }
0x146c   :  { %v2091_v44 = vsel %vm565_vm11, %v3823_v12, 0.0  ;;  %v3825_v11 = vpop.eup %3824 }
0x146d   :  { %2092 = vadd.xlane.f32.xlu0 %v2091_v44  ;;  %v2088_v30 = vsel %vm565_vm11, %v3825_v11, 0.0 }
0x1472   :  { %3751 = vrot.lane.b32.xlu1 %v4359_v18, %s3919_s14 }
0x1483   :  { %3746 = vrot.lane.b32.xlu0 %v4359_v18, %s3921_s16 }
0x1487   :  { %2187 = vrot.lane.b32.xlu0 %v4351_v4, %s3920_s15 }
0x1496   :  { %2089 = vadd.xlane.f32.xlu1 %v2088_v30 }
0x14a7   :  { %2185 = vrot.lane.b32.xlu1 %v4353_v60, %s3920_s15 }
0x14ed   :  { %v1889_v58 = vpop.xlane.xlu0 %1888 }
0x14ee   :  { %3826 = vrcp.f32 %v1889_v58  ;;  %v1886_v13 = vpop.xlane.xlu1 %1885 }
0x14ef   :  { %3828 = vrcp.f32 %v1886_v13 }
0x14f2   :  { %v3752_v10 = vpop.permute.xlu1 %3751 }
0x14f3   :  { %v3754_v25 = vunpack.i.h.bf16 %v3752_v10  ;;  %v3753_v26 = vunpack.i.l.bf16 %v3752_v10 }
0x14f5   :  { %v3613_v57 = vpack.c.bf16 %v3754_v25, %v3753_v26 }
0x14f8   :  { %v3827_v62 = vpop.eup %3826 }
0x14f9   :  { %v3829_v46 = vpop.eup %3828  ;;  %v1893_v47 = vmul.f32 %v3827_v62, %v3819_v41 }
0x14fa   :  { %v2093_v63 = vpop.xlane.xlu0 %2092  ;;  %v1892_v22 = vmul.f32 %v3829_v46, %v3821_v23 }
0x14fb   :  { %3830 = vrcp.f32 %v2093_v63 }
0x14fc   :  { %3408 = vmatprep.mubr.msk.f32.mxu0 %vm565_vm11, %v1892_v22 }
0x14fd   :  { %3409 = vmatmul.mubr.msk.f32.vlgmr.msra.gmra.mrb[12].mxu0 %vm565_vm11, %v1893_v47 }
0x14fe   :  { %v3747_v20 = vpop.permute.xlu0 %3746 }
0x14ff   :  { %v3749_v49 = vunpack.i.h.bf16 %v3747_v20  ;;  %v3748_v48 = vunpack.i.l.bf16 %v3747_v20 }
0x1501   :  { %v3609_v61 = vpack.c.bf16 %v3749_v49, %v3748_v48 }
0x1502   :  { %v2188_v34 = vpop.permute.xlu0 %2187 }
0x1503   :  { %3610 = vmatprep.subr.bf16.mxu0 %v3609_v61 }
0x1504   :  { %3612 = vmatpush3.bf16.msra.mxu0 %v3609_v61 }
0x1505   :  { %3615 = vmatprep.subr.msk.bf16.mxu0 %vm4177_vm10, %v3613_v57  ;;  %v3831_v54 = vpop.eup %3830 }
0x1506   :  { %v2097_v56 = vmul.f32 %v3831_v54, %v3823_v12 }
0x1523   :  { %v2090_v27 = vpop.xlane.xlu1 %2089 }
0x1524   :  { %3832 = vrcp.f32 %v2090_v27 }
0x1527   :  { %v2186_v35 = vpop.permute.xlu1 %2185 }
0x152e   :  { %v3833_v15 = vpop.eup %3832 }
0x152f   :  { %v2096_v50 = vmul.f32 %v3833_v15, %v3825_v11 }
0x1531   :  { %3422 = vmatprep.mubr.msk.f32.mxu0 %vm565_vm11, %v2096_v50 }
0x1532   :  { %3423 = vmatmul.mubr.msk.f32.vlgmr.msra.gmra.mrb[14].mxu0 %vm565_vm11, %v2097_v56 }
0x1533   :  { %3618 = vmatpush3.bf16.xpose.msk.msra.mxu0 %vm4177_vm10, %v3613_v57  ;;  %3429 = vmatprep.mubr.msk.f32.mxu0 %vm477_vm9, %v2186_v35 }
0x153a   :  { %3430 = vmatmul.mubr.msk.f32.vlgmr.msra.gmra.mrb[16].mxu0 %vm477_vm9, %v2188_v34 }
0x15d0   :  { %v4413_v24 = vpop.f32.mrb[12].mxu0 }
0x15d1   :  { %v4415_v40 = vpop.f32.mrb[13].mxu0 }
0x1605   :  { %v4417_v16 = vpop.f32.mrb[14].mxu0 }
0x1606   :  { %v4419_v55 = vpop.f32.mrb[15].mxu0 }
0x160d   :  { %v3431_v52 = vpop.f32.mrb[16].mxu0 }
0x160e   :  { %v2277_v9 = vmul.f32 0.35355338, %v3431_v52  ;;  %v2267_v53 = vpop.f32.mrb[17].mxu0 }
0x160f   :  { %v2276_v29 = vmul.f32 0.35355338, %v2267_v53 }
0x1610   :  { %v2279_v36 = vadd.f32 %v3862_v39, %v2277_v9 }
0x1611   :  { %v2278_v37 = vadd.f32 %v3863_v32, %v2276_v29 }
0x1612   :  { %v2283_v8 = vsel %vm565_vm11, %v2279_v36, -inf }
0x1613   :  { %2284 = vmax.xlane.f32.xlu0 %v2283_v8  ;;  %v2280_v17 = vsel %vm565_vm11, %v2278_v37, -inf }
0x1614   :  { %2281 = vmax.xlane.f32.xlu1 %v2280_v17 }
0x16a0   :  { %v2285_v42 = vpop.xlane.xlu0 %2284 }
0x16a1   :  { %v2287_v41 = vsub.f32 %v2279_v36, %v2285_v42  ;;  %v2282_v23 = vpop.xlane.xlu1 %2281 }
0x16a2   :  { %v2286_v28 = vsub.f32 %v2278_v37, %v2282_v23 }
0x16a3   :  { %v2290_v31 = vmul.f32 1.442695, %v2287_v41 }
0x16a4   :  { %v2288_v45 = vmul.f32 1.442695, %v2286_v28 }
0x16a5   :  { %3834 = vpow2.f32 %v2290_v31 }
0x16a6   :  { %3836 = vpow2.f32 %v2288_v45 }
0x16af   :  { %v3835_v12 = vpop.eup %3834 }
0x16b0   :  { %v3837_v44 = vpop.eup %3836  ;;  %v2295_v38 = vsel %vm565_vm11, %v3835_v12, 0.0 }
0x16b1   :  { %2296 = vadd.xlane.f32.xlu1 %v2295_v38  ;;  %v2292_v51 = vsel %vm565_vm11, %v3837_v44, 0.0  ;;  %v1679_v38 = vld [vmem:[#allocation2 + $0x160] sm:$0xff] }
0x16b2   :  { %2293 = vadd.xlane.f32.xlu0 %v2292_v51 }
0x16c2   :  { %3761 = vrot.lane.b32.xlu1 %v4359_v18, %s3922_s17 }
0x16c6   :  { %2389 = vrot.lane.b32.xlu1 %v4353_v60, %s3923_s18 }
0x16c8   :  { %3756 = vrot.lane.b32.xlu0 %v4359_v18, %s3924_s19 }
0x16cc   :  { %2391 = vrot.lane.b32.xlu0 %v4351_v4, %s3923_s18 }
0x173e   :  { %v2297_v11 = vpop.xlane.xlu1 %2296 }
0x173f   :  { %3838 = vrcp.f32 %v2297_v11  ;;  %v2294_v30 = vpop.xlane.xlu0 %2293  ;;  %v1680_v11 = vld [vmem:[#allocation2 + $0x168] sm:$0xff] }
0x1740   :  { %3840 = vrcp.f32 %v2294_v30  ;;  %v3637_v30 = vpack.c.bf16 %v1680_v11, %v1679_v38 }
0x1742   :  { %v3762_v58 = vpop.permute.xlu1 %3761 }
0x1743   :  { %v3757_v13 = vpop.permute.xlu0 %3756  ;;  %v3764_v62 = vunpack.i.h.bf16 %v3762_v58  ;;  %v3763_v46 = vunpack.i.l.bf16 %v3762_v58 }
0x1744   :  { %v3759_v63 = vunpack.i.h.bf16 %v3757_v13  ;;  %v3758_v22 = vunpack.i.l.bf16 %v3757_v13 }
0x1745   :  { %v3623_v10 = vpack.c.bf16 %v3764_v62, %v3763_v46 }
0x1746   :  { %v3619_v47 = vpack.c.bf16 %v3759_v63, %v3758_v22  ;;  %v2390_v26 = vpop.permute.xlu1 %2389 }
0x1747   :  { %v2392_v49 = vpop.permute.xlu0 %2391 }
0x1748   :  { %3620 = vmatprep.subr.bf16.mxu1 %v3619_v47 }
0x1749   :  { %v3839_v60 = vpop.eup %3838  ;;  %3622 = vmatpush3.bf16.msra.mxu1 %v3619_v47 }
0x174a   :  { %v3841_v20 = vpop.eup %3840  ;;  %3625 = vmatprep.subr.msk.bf16.mxu1 %vm4177_vm10, %v3623_v10  ;;  %v2301_v25 = vmul.f32 %v3839_v60, %v3835_v12 }
0x174b   :  { %v2300_v4 = vmul.f32 %v3841_v20, %v3837_v44  ;;  %v1678_v44 = vld [vmem:[#allocation2 + $0x158] sm:$0xff] }
0x174d   :  { %3436 = vmatprep.mubr.msk.f32.mxu1 %vm565_vm11, %v2300_v4 }
0x174e   :  { %3437 = vmatmul.mubr.msk.f32.vlgmr.msra.gmra.mrb[18].mxu1 %vm565_vm11, %v2301_v25 }
0x174f   :  { %3443 = vmatprep.mubr.msk.f32.mxu1 %vm477_vm9, %v2390_v26 }
0x1752   :  { %3628 = vmatpush3.bf16.xpose.msk.msra.mxu1 %vm4177_vm10, %v3623_v10 }
0x1759   :  { %3444 = vmatmul.mubr.msk.f32.vlgmr.msra.gmra.mrb[20].mxu1 %vm477_vm9, %v2392_v49 }
0x1821   :  { %v3438_v48 = vpop.f32.mrb[18].mxu1 }
0x1822   :  { %v2380_v61 = vpop.f32.mrb[19].mxu1 }
0x182c   :  { %v3445_v57 = vpop.f32.mrb[20].mxu1 }
0x182d   :  { %v2481_v27 = vmul.f32 0.35355338, %v3445_v57  ;;  %v2471_v54 = vpop.f32.mrb[21].mxu1 }
0x182e   :  { %v2480_v15 = vmul.f32 0.35355338, %v2471_v54 }
0x182f   :  { %v2483_v50 = vadd.f32 %v3862_v39, %v2481_v27 }
0x1830   :  { %v2482_v56 = vadd.f32 %v3863_v32, %v2480_v15 }
0x1831   :  { %v2487_v35 = vsel %vm565_vm11, %v2483_v50, -inf }
0x1832   :  { %2488 = vmax.xlane.f32.xlu0 %v2487_v35  ;;  %v2484_v34 = vsel %vm565_vm11, %v2482_v56, -inf }
0x1833   :  { %2485 = vmax.xlane.f32.xlu1 %v2484_v34 }
0x18bf   :  { %v2489_v52 = vpop.xlane.xlu0 %2488 }
0x18c0   :  { %v2491_v1 = vsub.f32 %v2483_v50, %v2489_v52  ;;  %v2486_v9 = vpop.xlane.xlu1 %2485 }
0x18c1   :  { %v2490_v53 = vsub.f32 %v2482_v56, %v2486_v9 }
0x18c2   :  { %v2494_v29 = vmul.f32 1.442695, %v2491_v1 }
0x18c3   :  { %v2492_v36 = vmul.f32 1.442695, %v2490_v53 }
0x18c4   :  { %3842 = vpow2.f32 %v2494_v29 }
0x18c5   :  { %3844 = vpow2.f32 %v2492_v36  ;;  %v1682_v36 = vld [vmem:[#allocation2 + $0x178] sm:$0xff] }
0x18ce   :  { %v3843_v37 = vpop.eup %3842 }
0x18cf   :  { %v3845_v8 = vpop.eup %3844  ;;  %v2499_v17 = vsel %vm565_vm11, %v3843_v37, 0.0 }
0x18d0   :  { %2500 = vadd.xlane.f32.xlu1 %v2499_v17  ;;  %v2496_v39 = vsel %vm565_vm11, %v3845_v8, 0.0  ;;  %v1684_v17 = vld [vmem:[#allocation2 + $0x188] sm:$0xff] }
0x18d1   :  { %2497 = vadd.xlane.f32.xlu0 %v2496_v39 }
0x18e1   :  { %2595 = vrot.lane.b32.xlu1 %v4419_v55, %s3914_s26 }
0x18e5   :  { %2597 = vrot.lane.b32.xlu1 %v4417_v16, %s3914_s26 }
0x18e7   :  { %3766 = vrot.lane.b32.xlu0 %v4359_v18, %s3925_s20  ;;  %v1677_v18 = vld [vmem:[#allocation2 + $0x150] sm:$0xff] }
0x18e8   :  { %v3633_v51 = vpack.c.bf16 %v1678_v44, %v1677_v18 }
0x18e9   :  { %2605 = vrot.lane.b32.xlu1 %v3438_v48, %s3926_s21 }
0x18eb   :  { %2603 = vrot.lane.b32.xlu0 %v2380_v61, %s3926_s21 }
0x195d   :  { %v2501_v32 = vpop.xlane.xlu1 %2500 }
0x195e   :  { %3846 = vrcp.f32 %v2501_v32  ;;  %v2498_v42 = vpop.xlane.xlu0 %2497 }
0x195f   :  { %3848 = vrcp.f32 %v2498_v42 }
0x1961   :  { %v2596_v62 = vpop.permute.xlu1 %2595 }
0x1962   :  { %v3767_v41 = vpop.permute.xlu0 %3766  ;;  %v2617_v47 = vsel %vm477_vm9, %v4415_v40, %v2596_v62  ;;  %v2626_v40 = vrot.slane %v4347_v21, %v3978_v7  ;;  %v1687_v62 = vld [vmem:[#allocation2 + $0x1a0] sm:$0xff] }
0x1963   :  { %v3769_v23 = vunpack.i.h.bf16 %v3767_v41  ;;  %v3768_v28 = vunpack.i.l.bf16 %v3767_v41 }
0x1965   :  { %v3629_v31 = vpack.c.bf16 %v3769_v23, %v3768_v28  ;;  %v2598_v46 = vpop.permute.xlu1 %2597 }
0x1966   :  { %v2604_v22 = vpop.permute.xlu0 %2603  ;;  %v2618_v60 = vsel %vm477_vm9, %v4413_v24, %v2598_v46  ;;  %v1688_v46 = vld [vmem:[#allocation2 + $0x1a8] sm:$0xff] }
0x1967   :  { %3630 = vmatprep.subr.bf16.mxu0 %v3629_v31  ;;  %v2619_v20 = vsel %vm565_vm11, %v2617_v47, %v2604_v22  ;;  %v1689_v22 = vld [vmem:[#allocation2 + $0x1b0] sm:$0xff]  ;;  %v1690_v47 = vld [vmem:[#allocation2 + $0x1b8] sm:$0xff] }
0x1968   :  { %v3847_v55 = vpop.eup %3846  ;;  %3632 = vmatpush3.bf16.msra.mxu0 %v3629_v31 }
0x1969   :  { %v3849_v45 = vpop.eup %3848  ;;  %v2505_v12 = vmul.f32 %v3847_v55, %v3843_v37  ;;  %3634 = vmatprep.subr.bf16.mxu0 %v3633_v51  ;;  %v2606_v63 = vpop.permute.xlu1 %2605  ;;  %v1683_v37 = vld [vmem:[#allocation2 + $0x180] sm:$0xff]  ;;  %v2739_v55 = vrot.slane %v4347_v21, %v1434_v14 }
0x196a   :  { %v2504_v16 = vmul.f32 %v3849_v45, %v3845_v8  ;;  %v2620_v25 = vsel %vm565_vm11, %v2618_v60, %v2606_v63  ;;  %v3645_v39 = vpack.c.bf16 %v1684_v17, %v1683_v37  ;;  %v3653_v63 = vpack.c.bf16 %v1688_v46, %v1687_v62  ;;  %v1692_v60 = vld [vmem:[#allocation2 + $0x1c8] sm:$0xff] }
0x196c   :  { %3450 = vmatprep.mubr.msk.f32.mxu0 %vm565_vm11, %v2504_v16 }
0x196d   :  { %3451 = vmatmul.mubr.msk.f32.vlgmr.msra.gmra.mrb[18].mxu0 %vm565_vm11, %v2505_v12  ;;  %v2745_v12 = vrot.slane %v4347_v21, %v1440_v59  ;;  %v3657_v59 = vpack.c.bf16 %v1690_v47, %v1689_v22  ;;  %v2967_v47 = vrot.slane %v4347_v21, %v1663_v33 }
0x196e   :  { %3636 = vmatpush3.bf16.msra.mxu0 %v3633_v51 }
0x196f   :  { %3638 = vmatprep.subr.bf16.mxu0 %v3637_v30 }
0x1972   :  { %3640 = vmatpush3.bf16.msra.mxu0 %v3637_v30 }
0x1a40   :  { %v3452_v58 = vpop.f32.mrb[18].mxu0 }
0x1a41   :  { %2613 = vrot.lane.b32.xlu1 %v3452_v58, %s3927_s22  ;;  %v2584_v13 = vpop.f32.mrb[19].mxu0  ;;  %v1685_v58 = vld [vmem:[#allocation2 + $0x190] sm:$0xff] }
0x1a42   :  { %2611 = vrot.lane.b32.xlu0 %v2584_v13, %s3927_s22  ;;  %v1686_v13 = vld [vmem:[#allocation2 + $0x198] sm:$0xff] }
0x1a43   :  { %v3649_v14 = vpack.c.bf16 %v1686_v13, %v1685_v58 }
0x1a45   :  { %3650 = vmatprep.subr.bf16.mxu0 %v3649_v14 }
0x1ab3   :  { %v2614_v10 = vpop.permute.xlu1 %2613 }
0x1ab4   :  { %v2612_v4 = vpop.permute.xlu0 %2611  ;;  %v2622_v49 = vsel %vm1315_vm12, %v2620_v25, %v2614_v10  ;;  %v1691_v10 = vld [vmem:[#allocation2 + $0x1c0] sm:$0xff] }
0x1ab5   :  { %v2621_v26 = vsel %vm1315_vm12, %v2619_v20, %v2612_v4  ;;  %v3661_v20 = vpack.c.bf16 %v1692_v60, %v1691_v10  ;;  %v2751_v4 = vrot.slane %v4347_v21, %v1446_v0 }
0x1ab6   :  { %3461 = vmatprep.mubr.msk.f32.mxu0 %vm112_vm1, %v2621_v26 }
0x1ab7   :  { %3462 = vmatmul.mubr.msk.f32.vlgmr.msra.gmra.mrb[20].mxu0 %vm112_vm1, %v2622_v49 }
0x1ab8   :  { %3652 = vmatpush3.bf16.msra.mxu0 %v3649_v14 }
0x1ab9   :  { %3654 = vmatprep.subr.bf16.mxu0 %v3653_v63 }
0x1abc   :  { %3656 = vmatpush3.bf16.msra.mxu0 %v3653_v63 }
0x1abd   :  { %3658 = vmatprep.subr.bf16.mxu0 %v3657_v59 }
0x1ac0   :  { %3660 = vmatpush3.bf16.msra.mxu0 %v3657_v59 }
0x1ac1   :  { %3662 = vmatprep.subr.bf16.mxu0 %v3661_v20 }
0x1ac4   :  { %3664 = vmatpush3.bf16.msra.mxu0 %v3661_v20 }
0x1b8a   :  { %v3463_v48 = vpop.f32.mrb[20].mxu0 }
0x1b8b   :  { %v2705_v61 = vadd.f32 %v3463_v48, %v2626_v40  ;;  %v2699_v57 = vpop.f32.mrb[21].mxu0 }
0x1b8c   :  { %v2700_v24 = vadd.f32 %v2699_v57, %v2626_v40 }
0x1b8d   :  { %v2709_v27 = vadd.f32 %v2705_v61, %v4341_v43 }
0x1b8e   :  { %v2708_v54 = vadd.f32 %v2700_v24, %v4339_v3  ;;  %v1681_v3 = vld [vmem:[#allocation2 + $0x170] sm:$0xff] }
0x1b8f   :  { %v2713_v15 = vsel %vm112_vm1, %v2709_v27, 0.0  ;;  %v3641_v8 = vpack.c.bf16 %v1682_v36, %v1681_v3 }
0x1b90   :  { %2714 = vadd.xlane.f32.xlu1 %v2713_v15  ;;  %v2710_v50 = vsel %vm112_vm1, %v2708_v54, 0.0 }
0x1b91   :  { %2711 = vadd.xlane.f32.xlu0 %v2710_v50  ;;  %3642 = vmatprep.subr.bf16.mxu1 %v3641_v8 }
0x1b92   :  { %3644 = vmatpush3.bf16.msra.mxu1 %v3641_v8 }
0x1b93   :  { %3646 = vmatprep.subr.bf16.mxu1 %v3645_v39 }
0x1b96   :  { %3648 = vmatpush3.bf16.msra.mxu1 %v3645_v39 }
0x1c1d   :  { %v2715_v56 = vpop.xlane.xlu1 %2714 }
0x1c1e   :  { %v2717_v35 = vmul.f32 0.03125, %v2715_v56  ;;  %v2712_v34 = vpop.xlane.xlu0 %2711 }
0x1c1f   :  { %v2716_v52 = vmul.f32 0.03125, %v2712_v34 }
0x1c20   :  { %v2719_v1 = vsub.f32 %v2709_v27, %v2717_v35 }
0x1c21   :  { %v2718_v7 = vsub.f32 %v2708_v54, %v2716_v52 }
0x1c22   :  { %v2721_v29 = vmul.f32 %v2719_v1, %v2719_v1 }
0x1c23   :  { %v2720_v9 = vmul.f32 %v2718_v7, %v2718_v7 }
0x1c24   :  { %v2725_v43 = vsel %vm112_vm1, %v2721_v29, 0.0 }
0x1c25   :  { %v2722_v53 = vsel %vm112_vm1, %v2720_v9, 0.0 }
0x1c26   :  { %2723 = vadd.xlane.f32.xlu0 %v2722_v53 }
0x1c2a   :  { %2726 = vadd.xlane.f32.xlu0 %v2725_v43  ;;  %v2854_v43 = vrot.slane %v4347_v21, %v1549_v19 }
0x1cb3   :  { %v2724_v32 = vpop.xlane.xlu0 %2723 }
0x1cb4   :  { %v2728_v42 = vmul.f32 0.03125, %v2724_v32 }
0x1cb6   :  { %v2730_v41 = vadd.f32 1e-12, %v2728_v42 }
0x1cb7   :  { %v2727_v23 = vpop.xlane.xlu0 %2726 }
0x1cb8   :  { %3850 = vrsqrt.f32 %v2730_v41  ;;  %v2729_v28 = vmul.f32 0.03125, %v2727_v23 }
0x1cba   :  { %v2731_v31 = vadd.f32 1e-12, %v2729_v28 }
0x1cbc   :  { %3852 = vrsqrt.f32 %v2731_v31 }
0x1cc2   :  { %v3851_v45 = vpop.eup %3850 }
0x1cc3   :  { %v2734_v16 = vmul.f32 %v3851_v45, %v2718_v7 }
0x1cc5   :  { %v2740_v18 = vmul.f32 %v2739_v55, %v2734_v16 }
0x1cc6   :  { %v3853_v44 = vpop.eup %3852 }
0x1cc7   :  { %v2735_v38 = vmul.f32 %v3853_v44, %v2719_v1  ;;  %v2746_v51 = vadd.f32 %v2745_v12, %v2740_v18  ;;  %v2976_v44 = vld [vmem:[#allocation2 + $0x1d8] sm:$0xff] }
0x1cc9   :  { %v2741_v11 = vmul.f32 %v2739_v55, %v2735_v38  ;;  %3472 = vmatprep.mubr.msk.f32.mxu1 %vm112_vm1, %v2746_v51  ;;  %v2977_v38 = vld [vmem:[#allocation2 + $0x1e0] sm:$0xff] }
0x1ccb   :  { %v2747_v30 = vadd.f32 %v2745_v12, %v2741_v11  ;;  %v3665_v11 = vpack.c.bf16 %v2977_v38, %v2976_v44 }
0x1ccd   :  { %3473 = vmatmul.mubr.msk.f32.vlgmr.msra.gmra.mrb[22].mxu1 %vm112_vm1, %v2747_v30  ;;  %3666 = vmatprep.subr.bf16.mxu1 %v3665_v11 }
0x1cce   :  { %3668 = vmatpush3.bf16.msra.mxu1 %v3665_v11 }
0x1da0   :  { %v3474_v25 = vpop.f32.mrb[22].mxu1 }
0x1da1   :  { %v2830_v26 = vadd.f32 %v3474_v25, %v2751_v4  ;;  %v2824_v49 = vpop.f32.mrb[23].mxu1 }
0x1da2   :  { %v2825_v40 = vadd.f32 %v2824_v49, %v2751_v4  ;;  %v2973_v4 = vrot.slane %v4347_v21, %v1669_v2 }
0x1da3   :  { %v2836_v48 = vmul.f32 0.044715, %v2830_v26  ;;  %v2834_v9 = vmul.f32 0.5, %v2830_v26 }
0x1da4   :  { %v2835_v61 = vmul.f32 0.044715, %v2825_v40  ;;  %v2833_v0 = vmul.f32 0.5, %v2825_v40 }
0x1da5   :  { %v2838_v57 = vmul.f32 %v2836_v48, %v2830_v26  ;;  %v2980_v48 = vld [vmem:[#allocation2 + $0x1f8] sm:$0xff] }
0x1da6   :  { %v2837_v24 = vmul.f32 %v2835_v61, %v2825_v40  ;;  %v2984_v61 = vrot.slane %v2980_v48, %v3975_v6 }
0x1da7   :  { %v2840_v27 = vmul.f32 %v2838_v57, %v2830_v26 }
0x1da8   :  { %v2839_v54 = vmul.f32 %v2837_v24, %v2825_v40 }
0x1da9   :  { %v2842_v15 = vadd.f32 %v2840_v27, %v2830_v26 }
0x1daa   :  { %v2841_v50 = vadd.f32 %v2839_v54, %v2825_v40 }
0x1dab   :  { %v2844_v56 = vmul.f32 0.7978846, %v2842_v15 }
0x1dac   :  { %v2843_v35 = vmul.f32 0.7978846, %v2841_v50 }
0x1dad   :  { %3854 = vtanh.f32 %v2844_v56 }
0x1dae   :  { %3856 = vtanh.f32 %v2843_v35 }
0x1db7   :  { %v3855_v34 = vpop.eup %3854 }
0x1db8   :  { %v3857_v52 = vpop.eup %3856  ;;  %v2848_v1 = vadd.f32 1.0, %v3855_v34 }
0x1db9   :  { %v2847_v7 = vadd.f32 1.0, %v3857_v52 }
0x1dba   :  { %v2850_v29 = vmul.f32 %v2848_v1, %v2834_v9 }
0x1dbb   :  { %v2849_v53 = vmul.f32 %v2847_v7, %v2833_v0 }
0x1dbd   :  { %3491 = vmatprep.mubr.msk.f32.mxu0 %vm1551_vm13, %v2849_v53 }
0x1dbe   :  { %3492 = vmatmul.mubr.msk.f32.vlgmr.msra.gmra.mrb[22].mxu0 %vm1551_vm13, %v2850_v29 }
0x1e91   :  { %v3493_v3 = vpop.f32.mrb[22].mxu0 }
0x1e92   :  { %v2933_v36 = vadd.f32 %v3493_v3, %v2854_v43  ;;  %v2927_v37 = vpop.f32.mrb[23].mxu0 }
0x1e93   :  { %v2928_v8 = vadd.f32 %v2927_v37, %v2854_v43 }
0x1e94   :  { %v2937_v17 = vadd.f32 %v2933_v36, %v2747_v30  ;;  %v2979_v30 = vld [vmem:[#allocation2 + $0x1f0] sm:$0xff] }
0x1e95   :  { %v2936_v39 = vadd.f32 %v2928_v8, %v2746_v51  ;;  %v2978_v51 = vld [vmem:[#allocation2 + $0x1e8] sm:$0xff] }
0x1e96   :  { %v2941_v32 = vsel %vm112_vm1, %v2937_v17, 0.0  ;;  %v3669_v58 = vpack.c.bf16 %v2979_v30, %v2978_v51 }
0x1e97   :  { %2942 = vadd.xlane.f32.xlu0 %v2941_v32  ;;  %v2938_v42 = vsel %vm112_vm1, %v2936_v39, 0.0 }
0x1e98   :  { %2939 = vadd.xlane.f32.xlu1 %v2938_v42  ;;  %3670 = vmatprep.subr.bf16.mxu1 %v3669_v58 }
0x1e99   :  { %3672 = vmatpush3.bf16.msra.mxu1 %v3669_v58 }
0x1f24   :  { %v2943_v41 = vpop.xlane.xlu0 %2942 }
0x1f25   :  { %v2945_v23 = vmul.f32 0.03125, %v2943_v41  ;;  %v2940_v28 = vpop.xlane.xlu1 %2939 }
0x1f26   :  { %v2944_v31 = vmul.f32 0.03125, %v2940_v28 }
0x1f27   :  { %v2947_v55 = vsub.f32 %v2937_v17, %v2945_v23 }
0x1f28   :  { %v2946_v45 = vsub.f32 %v2936_v39, %v2944_v31 }
0x1f29   :  { %v2949_v16 = vmul.f32 %v2947_v55, %v2947_v55 }
0x1f2a   :  { %v2948_v19 = vmul.f32 %v2946_v45, %v2946_v45 }
0x1f2b   :  { %v2953_v12 = vsel %vm112_vm1, %v2949_v16, 0.0 }
0x1f2c   :  { %2954 = vadd.xlane.f32.xlu0 %v2953_v12  ;;  %v2950_v18 = vsel %vm112_vm1, %v2948_v19, 0.0 }
0x1f2d   :  { %2951 = vadd.xlane.f32.xlu1 %v2950_v18 }
0x1fb9   :  { %v2955_v13 = vpop.xlane.xlu0 %2954 }
0x1fba   :  { %v2957_v62 = vmul.f32 0.03125, %v2955_v13  ;;  %v2952_v14 = vpop.xlane.xlu1 %2951 }
0x1fbb   :  { %v2956_v46 = vmul.f32 0.03125, %v2952_v14 }
0x1fbc   :  { %v2959_v63 = vadd.f32 1e-12, %v2957_v62 }
0x1fbd   :  { %v2958_v22 = vadd.f32 1e-12, %v2956_v46 }
0x1fbe   :  { %3858 = vrsqrt.f32 %v2959_v63 }
0x1fbf   :  { %3860 = vrsqrt.f32 %v2958_v22 }
0x1fc8   :  { %v3859_v59 = vpop.eup %3858 }
0x1fc9   :  { %v3861_v10 = vpop.eup %3860  ;;  %v2963_v60 = vmul.f32 %v3859_v59, %v2947_v55 }
0x1fca   :  { %v2962_v20 = vmul.f32 %v3861_v10, %v2946_v45 }
0x1fcb   :  { %v2969_v25 = vmul.f32 %v2967_v47, %v2963_v60 }
0x1fcc   :  { %v2968_v26 = vmul.f32 %v2967_v47, %v2962_v20 }
0x1fcd   :  { %v2975_v40 = vadd.f32 %v2973_v4, %v2969_v25 }
0x1fce   :  { %v2974_v49 = vadd.f32 %v2973_v4, %v2968_v26 }
0x1fd0   :  { %3502 = vmatprep.mubr.msk.f32.mxu1 %vm112_vm1, %v2974_v49 }
0x1fd1   :  { %3503 = vmatmul.mubr.msk.f32.vlgmr.msra.gmra.mrb[24].mxu1 %vm112_vm1, %v2975_v40 }
0x20a4   :  { %v3504_v33 = vpop.f32.mrb[24].mxu1 }
0x20a5   :  { %v3063_v57 = vadd.f32 %v3504_v33, %v2984_v61  ;;  %v3057_v24 = vpop.f32.mrb[25].mxu1 }
0x20a6   :  { %v3058_v27 = vadd.f32 %v3057_v24, %v2984_v61 }
0x20a7   :  { %3067 = vst [vmem:[#allocation5 + $0x8] sm:$0xff] %v3063_v57 }
0x20a8   :  { %3066 = vst [vmem:[#allocation5] sm:$0xff] %v3058_v27 }
0x20a9   :  { %3897 = shalt.err (!%p3894_p12)
}
0x20aa   :  { %s3898_s5 = scalar_lea.hbm %s4529_s4, 256 }
0x20ab   :  { %p3899_p13 = scmp.ne.s32.totalorder %s4529_s4, %s3898_s5  ;;  %p3902_p0 = scmp.lt.u32.totalorder %s3898_s5, %s4529_s4 }
0x20ad   :  { %p3904_p1 = pnand %p3902_p0, %p3899_p13 }
0x20af   :  { %3907 = shalt.err (!%p3904_p1)
}
0x20b0   :  { %3079 = dma.vmem_to_hbm [thread:$0]  %s3074_s29, 256, %s4529_s4, [#allocation4], %s3913_s25, %s3913_s25, %s3914_s26  }
0x20b1   :  { %3910 = dma.done.wait [#allocation4], 256  }
0x20b2   :  { %3911 = vsyncadd [#allocation4], 4294967040 }
0x20b3   :  { %3083 = vsyncpa [#allocation3], 1 }
0x20b4   :  { %3084 = vsyncpa [#allocation4], 1 }

</bundles_post_ra>
